<compile_context>
chip_gen: v6e
topology: v6e:2x2x1
jax: 0.10.0
libtpu: 0.0.40
codegen_flags: <defaults>
</compile_context>

<pallas_src>
import functools

import jax
import jax.numpy as jnp
from jax.experimental import pallas as pl
from jax.experimental.pallas import tpu as pltpu

EPS = 1e-5  # PyTorch nn.LayerNorm default eps


def _layernorm(x, g, b):
    mu = jnp.mean(x, axis=-1, keepdims=True)
    var = jnp.mean(jnp.square(x - mu), axis=-1, keepdims=True)
    return (x - mu) * jax.lax.rsqrt(var + EPS) * g + b


def switch_layer_kernel(
    x_ref,                                         # (L, D) tokens of one batch
    wq_ref, wk_ref, wv_ref,                        # (H, D, hd) per-head proj
    bq_ref, bk_ref, bv_ref,                        # (H, 1, hd)
    wo_ref, bo_ref,                                # (H, hd, D), (1, D)
    w1_ref, b1_ref, w2_ref, b2_ref,                # feed-forward
    wsw_ref, bsw_ref,                              # fused switch+switch_out
    g1_ref, be1_ref, g2_ref, be2_ref, g3_ref, be3_ref,   # layer norms
    out_ref,                                       # (L, D)
    *, num_heads,
):
    H = num_heads
    L, D = x_ref.shape
    hd = D // H
    scale = 1.0 / (hd ** 0.5)

    tok = x_ref[...]                               # (L, D)
    tok_h = jnp.broadcast_to(tok[None, :, :], (H, L, D))

    # ---------------- self-attention (batched over heads) ----------------
    q = jnp.einsum("hld,hdk->hlk", tok_h, wq_ref[...],
                   preferred_element_type=jnp.float32) + bq_ref[...]
    k = jnp.einsum("hld,hdk->hlk", tok_h, wk_ref[...],
                   preferred_element_type=jnp.float32) + bk_ref[...]
    v = jnp.einsum("hld,hdk->hlk", tok_h, wv_ref[...],
                   preferred_element_type=jnp.float32) + bv_ref[...]

    s = jnp.einsum("hqd,hkd->hqk", q, k,
                   preferred_element_type=jnp.float32) * scale      # (H, L, L)
    m = jnp.max(s, axis=-1, keepdims=True)
    e = jnp.exp(s - m)
    denom = jnp.sum(e, axis=-1, keepdims=True)
    p = e * pl.reciprocal(denom, approx=True)                        # softmax

    o = jnp.einsum("hqk,hkd->hqd", p, v,
                   preferred_element_type=jnp.float32)               # (H, L, hd)

    # Output projection: sum_h o_h @ Wo_h, no VMEM scratch round-trip.
    attn = jnp.sum(
        jnp.einsum("hld,hdm->hlm", o, wo_ref[...],
                   preferred_element_type=jnp.float32),
        axis=0) + bo_ref[...]                                        # (L, D)

    x1 = _layernorm(attn + tok, g1_ref[...], be1_ref[...])

    # ---------------- feed-forward ----------------
    h1 = jnp.maximum(
        jnp.dot(x1, w1_ref[...], preferred_element_type=jnp.float32)
        + b1_ref[...], 0.0)
    ffo = jnp.dot(h1, w2_ref[...],
                  preferred_element_type=jnp.float32) + b2_ref[...]
    x2 = _layernorm(ffo + x1, g2_ref[...], be2_ref[...])

    # ---------------- switch[0] + switch_out (fused, exact) ----------------
    so = jnp.dot(x2, wsw_ref[...],
                 preferred_element_type=jnp.float32) + bsw_ref[...]
    x3 = _layernorm(so + x2, g3_ref[...], be3_ref[...])

    out_ref[...] = x3


def switch_transformer_layer(x, y, params, num_heads):
    """x, y: (L, B, D) float32. y is unused (matches the PyTorch forward)."""
    del y
    L, B, D = x.shape
    H = num_heads
    hd = D // H
    p = params

    # TODO(synk): replace this wrapper transpose with a strided
    # BlockSpec((L, None, D)) over the original (L, B, D) layout once the
    # second-minor size-1 window is validated on all target generations.
    xb = jnp.transpose(x, (1, 0, 2))               # (B, L, D)

    # Per-head projection weights: wq_h[h] = Wq[h*hd:(h+1)*hd, :].T  (D, hd).
    def head_in(w):                                 # PyTorch (out=D, in=D)
        return jnp.transpose(jnp.transpose(w).reshape(D, H, hd), (1, 0, 2))

    def head_bias(b):
        return b.reshape(H, 1, hd)

    # Out-projection split along its input (concat-of-heads) dim: (H, hd, D).
    wo_h = jnp.transpose(p["wo"]).reshape(H, hd, D)

    # switch[0] + switch_out algebraic fusion (exact: no nonlinearity between).
    w_sw = jnp.transpose(p["ws"]) @ jnp.transpose(p["wso"])   # (D, D)
    b_sw = p["bs"] @ jnp.transpose(p["wso"]) + p["bso"]       # (D,)

    def row(b):
        return b[None, :]

    weights = [
        head_in(p["wq"]), head_in(p["wk"]), head_in(p["wv"]),
        head_bias(p["bq"]), head_bias(p["bk"]), head_bias(p["bv"]),
        wo_h, row(p["bo"]),
        jnp.transpose(p["w1"]), row(p["b1"]),
        jnp.transpose(p["w2"]), row(p["b2"]),
        w_sw, row(b_sw),
        row(p["g1"]), row(p["be1"]),
        row(p["g2"]), row(p["be2"]),
        row(p["g3"]), row(p["be3"]),
    ]

    def const_spec(a):
        nd = a.ndim
        return pl.BlockSpec(a.shape, lambda *_: (0,) * nd)

    in_specs = ([pl.BlockSpec((None, L, D), lambda b: (b, 0, 0))]
                + [const_spec(a) for a in weights])
    out_spec = pl.BlockSpec((None, L, D), lambda b: (b, 0, 0))

    d_ff = p["w1"].shape[0]
    T = B * L
    flops = int(2 * T * D * (3 * D + 2 * L + D + 2 * d_ff + D))
    transcendentals = int(B * H * L * L + B * H * L + 3 * T)
    bytes_accessed = int(4 * (2 * x.size + sum(int(w.size) for w in weights)))

    kernel = functools.partial(switch_layer_kernel, num_heads=num_heads)

    out_b = pl.pallas_call(
        kernel,
        out_shape=jax.ShapeDtypeStruct((B, L, D), jnp.float32),
        grid=(B,),
        in_specs=in_specs,
        out_specs=out_spec,
        compiler_params=pltpu.CompilerParams(
            dimension_semantics=("parallel",)),
        cost_estimate=pl.CostEstimate(
            flops=flops,
            transcendentals=transcendentals,
            bytes_accessed=bytes_accessed),
    )(xb, *weights)

    return jnp.transpose(out_b, (1, 0, 2))         # back to (L, B, D)


def init_params(key, num_heads, d_model, d_ff, num_switch):
    ks = jax.random.split(key, 12)

    def w(k, shape):
        return jax.random.normal(k, shape, jnp.float32) * 0.05

    return {
        # self_attn (in_proj split into q/k/v; PyTorch Linear weights are (out,in))
        "wq": w(ks[0], (d_model, d_model)), "bq": w(ks[1], (d_model,)),
        "wk": w(ks[2], (d_model, d_model)), "bk": w(ks[3], (d_model,)),
        "wv": w(ks[4], (d_model, d_model)), "bv": w(ks[5], (d_model,)),
        "wo": w(ks[6], (d_model, d_model)), "bo": jnp.zeros((d_model,), jnp.float32),
        # ff
        "w1": w(ks[7], (d_ff, d_model)), "b1": jnp.zeros((d_ff,), jnp.float32),
        "w2": w(ks[8], (d_model, d_ff)), "b2": jnp.zeros((d_model,), jnp.float32),
        # switch[0] and switch_out
        "ws": w(ks[9], (num_switch, d_model)), "bs": jnp.zeros((num_switch,), jnp.float32),
        "wso": w(ks[10], (d_model, num_switch)), "bso": jnp.zeros((d_model,), jnp.float32),
        # layer norms
        "g1": jnp.ones((d_model,), jnp.float32), "be1": jnp.zeros((d_model,), jnp.float32),
        "g2": jnp.ones((d_model,), jnp.float32), "be2": jnp.zeros((d_model,), jnp.float32),
        "g3": jnp.ones((d_model,), jnp.float32), "be3": jnp.zeros((d_model,), jnp.float32),
    }


def reference_forward(x, p, num_heads):
    """Pure-JAX replica of the PyTorch module (dropout=0)."""
    L, B, D = x.shape
    H = num_heads
    hd = D // H

    def ln(t, g, b):
        mu = t.mean(-1, keepdims=True)
        var = ((t - mu) ** 2).mean(-1, keepdims=True)
        return (t - mu) / jnp.sqrt(var + EPS) * g + b

    q = x @ p["wq"].T + p["bq"]
    k = x @ p["wk"].T + p["bk"]
    v = x @ p["wv"].T + p["bv"]

    def heads(t):  # (L,B,D) -> (B,H,L,hd)
        return t.reshape(L, B, H, hd).transpose(1, 2, 0, 3)

    qh, kh, vh = heads(q), heads(k), heads(v)
    scores = jnp.einsum("bhld,bhmd->bhlm", qh, kh) / jnp.sqrt(hd)
    attn_p = jax.nn.softmax(scores, axis=-1)
    o = jnp.einsum("bhlm,bhmd->bhld", attn_p, vh)
    o = o.transpose(2, 0, 1, 3).reshape(L, B, D)
    attn = o @ p["wo"].T + p["bo"]

    x1 = ln(attn + x, p["g1"], p["be1"])
    h = jax.nn.relu(x1 @ p["w1"].T + p["b1"])
    ffo = h @ p["w2"].T + p["b2"]
    x2 = ln(ffo + x1, p["g2"], p["be2"])
    s = x2 @ p["ws"].T + p["bs"]
    so = s @ p["wso"].T + p["bso"]
    return ln(so + x2, p["g3"], p["be3"])


if __name__ == "__main__":
    num_heads, d_model, d_ff, num_switch, num_switch_layer = 4, 32, 64, 4, 1
    L, B = 8, 2

    key = jax.random.PRNGKey(0)
    kx, ky, kp = jax.random.split(key, 3)
    x = jax.random.normal(kx, (L, B, d_model), jnp.float32)
    y = jax.random.normal(ky, (L, B, d_model), jnp.float32)  # unused by forward
    params = init_params(kp, num_heads, d_model, d_ff, num_switch)

    out = switch_transformer_layer(x, y, params, num_heads)
    out = jax.block_until_ready(out)

    ref = reference_forward(x, params, num_heads)
    assert out.shape == (L, B, d_model)
    # Tolerance slightly looser than 1e-4 because the softmax denominator uses
    # the EUP approximate reciprocal (pl.reciprocal(approx=True)); real bugs
    # produce O(0.1-1) errors and are still caught.
    assert jnp.allclose(out, ref, atol=2e-3, rtol=2e-3), "mismatch vs pure-JAX reference"

    print("KERNEL_OK")
</pallas_src>

<mosaic_0001>
module attributes {stable_mosaic.version = 11 : i64} {
  func.func @switch_layer_kernel(%arg0: i32, %arg1: memref<1x8x32xf32, #tpu.memory_space<vmem>>, %arg2: memref<4x32x8xf32, #tpu.memory_space<vmem>>, %arg3: memref<4x32x8xf32, #tpu.memory_space<vmem>>, %arg4: memref<4x32x8xf32, #tpu.memory_space<vmem>>, %arg5: memref<4x1x8xf32, #tpu.memory_space<vmem>>, %arg6: memref<4x1x8xf32, #tpu.memory_space<vmem>>, %arg7: memref<4x1x8xf32, #tpu.memory_space<vmem>>, %arg8: memref<4x8x32xf32, #tpu.memory_space<vmem>>, %arg9: memref<1x32xf32, #tpu.memory_space<vmem>>, %arg10: memref<32x64xf32, #tpu.memory_space<vmem>>, %arg11: memref<1x64xf32, #tpu.memory_space<vmem>>, %arg12: memref<64x32xf32, #tpu.memory_space<vmem>>, %arg13: memref<1x32xf32, #tpu.memory_space<vmem>>, %arg14: memref<32x32xf32, #tpu.memory_space<vmem>>, %arg15: memref<1x32xf32, #tpu.memory_space<vmem>>, %arg16: memref<1x32xf32, #tpu.memory_space<vmem>>, %arg17: memref<1x32xf32, #tpu.memory_space<vmem>>, %arg18: memref<1x32xf32, #tpu.memory_space<vmem>>, %arg19: memref<1x32xf32, #tpu.memory_space<vmem>>, %arg20: memref<1x32xf32, #tpu.memory_space<vmem>>, %arg21: memref<1x32xf32, #tpu.memory_space<vmem>>, %arg22: memref<1x8x32xf32, #tpu.memory_space<vmem>>) attributes {dimension_semantics = [#tpu.dimension_semantics<parallel>], iteration_bounds = array<i64: 2>, scalar_prefetch = 0 : i64, scratch_operands = 0 : i64, tpu.core_type = #tpu.core_type<tc>, window_params = [{transform_indices = @transform_0, window_bounds = array<i64: 1, 8, 32>}, {pipeline_mode = #tpu.pipeline_mode<synchronous>, transform_indices = @transform_1, window_bounds = array<i64: 4, 32, 8>}, {pipeline_mode = #tpu.pipeline_mode<synchronous>, transform_indices = @transform_2, window_bounds = array<i64: 4, 32, 8>}, {pipeline_mode = #tpu.pipeline_mode<synchronous>, transform_indices = @transform_3, window_bounds = array<i64: 4, 32, 8>}, {pipeline_mode = #tpu.pipeline_mode<synchronous>, transform_indices = @transform_4, window_bounds = array<i64: 4, 1, 8>}, {pipeline_mode = #tpu.pipeline_mode<synchronous>, transform_indices = @transform_5, window_bounds = array<i64: 4, 1, 8>}, {pipeline_mode = #tpu.pipeline_mode<synchronous>, transform_indices = @transform_6, window_bounds = array<i64: 4, 1, 8>}, {pipeline_mode = #tpu.pipeline_mode<synchronous>, transform_indices = @transform_7, window_bounds = array<i64: 4, 8, 32>}, {pipeline_mode = #tpu.pipeline_mode<synchronous>, transform_indices = @transform_8, window_bounds = array<i64: 1, 32>}, {pipeline_mode = #tpu.pipeline_mode<synchronous>, transform_indices = @transform_9, window_bounds = array<i64: 32, 64>}, {pipeline_mode = #tpu.pipeline_mode<synchronous>, transform_indices = @transform_10, window_bounds = array<i64: 1, 64>}, {pipeline_mode = #tpu.pipeline_mode<synchronous>, transform_indices = @transform_11, window_bounds = array<i64: 64, 32>}, {pipeline_mode = #tpu.pipeline_mode<synchronous>, transform_indices = @transform_12, window_bounds = array<i64: 1, 32>}, {pipeline_mode = #tpu.pipeline_mode<synchronous>, transform_indices = @transform_13, window_bounds = array<i64: 32, 32>}, {pipeline_mode = #tpu.pipeline_mode<synchronous>, transform_indices = @transform_14, window_bounds = array<i64: 1, 32>}, {pipeline_mode = #tpu.pipeline_mode<synchronous>, transform_indices = @transform_15, window_bounds = array<i64: 1, 32>}, {pipeline_mode = #tpu.pipeline_mode<synchronous>, transform_indices = @transform_16, window_bounds = array<i64: 1, 32>}, {pipeline_mode = #tpu.pipeline_mode<synchronous>, transform_indices = @transform_17, window_bounds = array<i64: 1, 32>}, {pipeline_mode = #tpu.pipeline_mode<synchronous>, transform_indices = @transform_18, window_bounds = array<i64: 1, 32>}, {pipeline_mode = #tpu.pipeline_mode<synchronous>, transform_indices = @transform_19, window_bounds = array<i64: 1, 32>}, {pipeline_mode = #tpu.pipeline_mode<synchronous>, transform_indices = @transform_20, window_bounds = array<i64: 1, 32>}, {transform_indices = @transform_21, window_bounds = array<i64: 1, 8, 32>}]} {
    %c0 = arith.constant 0 : index
    %c0_0 = arith.constant 0 : index
    %c0_1 = arith.constant 0 : index
    %0 = vector.load %arg1[%c0, %c0_0, %c0_1] : memref<1x8x32xf32, #tpu.memory_space<vmem>>, vector<1x8x32xf32>
    %1 = vector.shape_cast %0 : vector<1x8x32xf32> to vector<8x32xf32>
    %2 = vector.shape_cast %1 : vector<8x32xf32> to vector<1x8x32xf32>
    %3 = vector.shape_cast %2 : vector<1x8x32xf32> to vector<1x8x32xf32>
    %4 = vector.broadcast %3 : vector<1x8x32xf32> to vector<4x8x32xf32>
    %c0_2 = arith.constant 0 : index
    %c0_3 = arith.constant 0 : index
    %c0_4 = arith.constant 0 : index
    %5 = vector.load %arg2[%c0_2, %c0_3, %c0_4] : memref<4x32x8xf32, #tpu.memory_space<vmem>>, vector<4x32x8xf32>
    "tpu.trace_start"() <{level = 10 : i32, message = "hld,hdk->hlk"}> : () -> ()
    %cst = arith.constant dense<0.000000e+00> : vector<4x8x8xf32>
    %6 = tpu.matmul %4, %5, %cst {dimension_numbers = #tpu.dot_dimension_numbers<[2], [1], [1], [2], [0, 0, 0, 1, 1, 2], [0], [0]>} : vector<4x8x32xf32>, vector<4x32x8xf32>, vector<4x8x8xf32> -> vector<4x8x8xf32>
    "tpu.trace_stop"() : () -> ()
    %c0_5 = arith.constant 0 : index
    %c0_6 = arith.constant 0 : index
    %c0_7 = arith.constant 0 : index
    %7 = vector.load %arg5[%c0_5, %c0_6, %c0_7] : memref<4x1x8xf32, #tpu.memory_space<vmem>>, vector<4x1x8xf32>
    %8 = vector.broadcast %7 : vector<4x1x8xf32> to vector<4x8x8xf32>
    %9 = arith.addf %6, %8 : vector<4x8x8xf32>
    %c0_8 = arith.constant 0 : index
    %c0_9 = arith.constant 0 : index
    %c0_10 = arith.constant 0 : index
    %10 = vector.load %arg3[%c0_8, %c0_9, %c0_10] : memref<4x32x8xf32, #tpu.memory_space<vmem>>, vector<4x32x8xf32>
    "tpu.trace_start"() <{level = 10 : i32, message = "hld,hdk->hlk"}> : () -> ()
    %cst_11 = arith.constant dense<0.000000e+00> : vector<4x8x8xf32>
    %11 = tpu.matmul %4, %10, %cst_11 {dimension_numbers = #tpu.dot_dimension_numbers<[2], [1], [1], [2], [0, 0, 0, 1, 1, 2], [0], [0]>} : vector<4x8x32xf32>, vector<4x32x8xf32>, vector<4x8x8xf32> -> vector<4x8x8xf32>
    "tpu.trace_stop"() : () -> ()
    %c0_12 = arith.constant 0 : index
    %c0_13 = arith.constant 0 : index
    %c0_14 = arith.constant 0 : index
    %12 = vector.load %arg6[%c0_12, %c0_13, %c0_14] : memref<4x1x8xf32, #tpu.memory_space<vmem>>, vector<4x1x8xf32>
    %13 = vector.broadcast %12 : vector<4x1x8xf32> to vector<4x8x8xf32>
    %14 = arith.addf %11, %13 : vector<4x8x8xf32>
    %c0_15 = arith.constant 0 : index
    %c0_16 = arith.constant 0 : index
    %c0_17 = arith.constant 0 : index
    %15 = vector.load %arg4[%c0_15, %c0_16, %c0_17] : memref<4x32x8xf32, #tpu.memory_space<vmem>>, vector<4x32x8xf32>
    "tpu.trace_start"() <{level = 10 : i32, message = "hld,hdk->hlk"}> : () -> ()
    %cst_18 = arith.constant dense<0.000000e+00> : vector<4x8x8xf32>
    %16 = tpu.matmul %4, %15, %cst_18 {dimension_numbers = #tpu.dot_dimension_numbers<[2], [1], [1], [2], [0, 0, 0, 1, 1, 2], [0], [0]>} : vector<4x8x32xf32>, vector<4x32x8xf32>, vector<4x8x8xf32> -> vector<4x8x8xf32>
    "tpu.trace_stop"() : () -> ()
    %c0_19 = arith.constant 0 : index
    %c0_20 = arith.constant 0 : index
    %c0_21 = arith.constant 0 : index
    %17 = vector.load %arg7[%c0_19, %c0_20, %c0_21] : memref<4x1x8xf32, #tpu.memory_space<vmem>>, vector<4x1x8xf32>
    %18 = vector.broadcast %17 : vector<4x1x8xf32> to vector<4x8x8xf32>
    %19 = arith.addf %16, %18 : vector<4x8x8xf32>
    "tpu.trace_start"() <{level = 10 : i32, message = "hqd,hkd->hqk"}> : () -> ()
    %cst_22 = arith.constant dense<0.000000e+00> : vector<4x8x8xf32>
    %20 = tpu.matmul %9, %14, %cst_22 {dimension_numbers = #tpu.dot_dimension_numbers<[2], [2], [1], [1], [0, 0, 0, 1, 1, 1], [0], [0]>} : vector<4x8x8xf32>, vector<4x8x8xf32>, vector<4x8x8xf32> -> vector<4x8x8xf32>
    "tpu.trace_stop"() : () -> ()
    %cst_23 = arith.constant 0.353553385 : f32
    %21 = vector.broadcast %cst_23 : f32 to vector<4x8x8xf32>
    %22 = arith.mulf %20, %21 : vector<4x8x8xf32>
    %cst_24 = arith.constant dense<0xFF800000> : vector<4x8xf32>
    %23 = vector.multi_reduction <maximumf>, %22, %cst_24 [2] : vector<4x8x8xf32> to vector<4x8xf32>
    %24 = vector.shape_cast %23 : vector<4x8xf32> to vector<4x8x1xf32>
    %25 = vector.broadcast %24 : vector<4x8x1xf32> to vector<4x8x8xf32>
    %26 = arith.subf %22, %25 : vector<4x8x8xf32>
    %27 = math.exp %26 : vector<4x8x8xf32>
    %cst_25 = arith.constant dense<0.000000e+00> : vector<4x8xf32>
    %28 = vector.multi_reduction <add>, %27, %cst_25 [2] : vector<4x8x8xf32> to vector<4x8xf32>
    %29 = vector.shape_cast %28 : vector<4x8xf32> to vector<4x8x1xf32>
    %30 = tpu.reciprocal %29 {approx = true} : vector<4x8x1xf32> -> vector<4x8x1xf32>
    %31 = vector.broadcast %30 : vector<4x8x1xf32> to vector<4x8x8xf32>
    %32 = arith.mulf %27, %31 : vector<4x8x8xf32>
    "tpu.trace_start"() <{level = 10 : i32, message = "hqk,hkd->hqd"}> : () -> ()
    %cst_26 = arith.constant dense<0.000000e+00> : vector<4x8x8xf32>
    %33 = tpu.matmul %32, %19, %cst_26 {dimension_numbers = #tpu.dot_dimension_numbers<[2], [1], [1], [2], [0, 0, 0, 1, 1, 2], [0], [0]>} : vector<4x8x8xf32>, vector<4x8x8xf32>, vector<4x8x8xf32> -> vector<4x8x8xf32>
    "tpu.trace_stop"() : () -> ()
    %c0_27 = arith.constant 0 : index
    %c0_28 = arith.constant 0 : index
    %c0_29 = arith.constant 0 : index
    %34 = vector.load %arg8[%c0_27, %c0_28, %c0_29] : memref<4x8x32xf32, #tpu.memory_space<vmem>>, vector<4x8x32xf32>
    "tpu.trace_start"() <{level = 10 : i32, message = "hld,hdm->hlm"}> : () -> ()
    %cst_30 = arith.constant dense<0.000000e+00> : vector<4x8x32xf32>
    %35 = tpu.matmul %33, %34, %cst_30 {dimension_numbers = #tpu.dot_dimension_numbers<[2], [1], [1], [2], [0, 0, 0, 1, 1, 2], [0], [0]>} : vector<4x8x8xf32>, vector<4x8x32xf32>, vector<4x8x32xf32> -> vector<4x8x32xf32>
    "tpu.trace_stop"() : () -> ()
    %cst_31 = arith.constant dense<0.000000e+00> : vector<8x32xf32>
    %36 = vector.multi_reduction <add>, %35, %cst_31 [0] : vector<4x8x32xf32> to vector<8x32xf32>
    %c0_32 = arith.constant 0 : index
    %c0_33 = arith.constant 0 : index
    %37 = vector.load %arg9[%c0_32, %c0_33] : memref<1x32xf32, #tpu.memory_space<vmem>>, vector<1x32xf32>
    %38 = vector.broadcast %37 : vector<1x32xf32> to vector<8x32xf32>
    %39 = arith.addf %36, %38 : vector<8x32xf32>
    %40 = arith.addf %39, %1 : vector<8x32xf32>
    %c0_34 = arith.constant 0 : index
    %c0_35 = arith.constant 0 : index
    %41 = vector.load %arg16[%c0_34, %c0_35] : memref<1x32xf32, #tpu.memory_space<vmem>>, vector<1x32xf32>
    %c0_36 = arith.constant 0 : index
    %c0_37 = arith.constant 0 : index
    %42 = vector.load %arg17[%c0_36, %c0_37] : memref<1x32xf32, #tpu.memory_space<vmem>>, vector<1x32xf32>
    %cst_38 = arith.constant dense<0.000000e+00> : vector<8xf32>
    %43 = vector.multi_reduction <add>, %40, %cst_38 [1] : vector<8x32xf32> to vector<8xf32>
    %44 = vector.shape_cast %43 : vector<8xf32> to vector<8x1xf32>
    %cst_39 = arith.constant 3.200000e+01 : f32
    %45 = vector.broadcast %cst_39 : f32 to vector<8x1xf32>
    %46 = arith.divf %44, %45 : vector<8x1xf32>
    %47 = vector.broadcast %46 : vector<8x1xf32> to vector<8x32xf32>
    %48 = arith.subf %40, %47 : vector<8x32xf32>
    %49 = arith.mulf %48, %48 : vector<8x32xf32>
    %cst_40 = arith.constant dense<0.000000e+00> : vector<8xf32>
    %50 = vector.multi_reduction <add>, %49, %cst_40 [1] : vector<8x32xf32> to vector<8xf32>
    %51 = vector.shape_cast %50 : vector<8xf32> to vector<8x1xf32>
    %cst_41 = arith.constant 3.200000e+01 : f32
    %52 = vector.broadcast %cst_41 : f32 to vector<8x1xf32>
    %53 = arith.divf %51, %52 : vector<8x1xf32>
    %54 = vector.broadcast %46 : vector<8x1xf32> to vector<8x32xf32>
    %55 = arith.subf %40, %54 : vector<8x32xf32>
    %cst_42 = arith.constant 9.99999974E-6 : f32
    %56 = vector.broadcast %cst_42 : f32 to vector<8x1xf32>
    %57 = arith.addf %53, %56 : vector<8x1xf32>
    %58 = math.rsqrt %57 : vector<8x1xf32>
    %59 = vector.broadcast %58 : vector<8x1xf32> to vector<8x32xf32>
    %60 = arith.mulf %55, %59 : vector<8x32xf32>
    %61 = vector.broadcast %41 : vector<1x32xf32> to vector<8x32xf32>
    %62 = arith.mulf %60, %61 : vector<8x32xf32>
    %63 = vector.broadcast %42 : vector<1x32xf32> to vector<8x32xf32>
    %64 = arith.addf %62, %63 : vector<8x32xf32>
    %c0_43 = arith.constant 0 : index
    %c0_44 = arith.constant 0 : index
    %65 = vector.load %arg10[%c0_43, %c0_44] : memref<32x64xf32, #tpu.memory_space<vmem>>, vector<32x64xf32>
    %cst_45 = arith.constant dense<0.000000e+00> : vector<8x64xf32>
    %66 = tpu.matmul %64, %65, %cst_45 {dimension_numbers = #tpu.dot_dimension_numbers<[1], [0], [0], [1], [0, 0, 1, 1], [], []>} : vector<8x32xf32>, vector<32x64xf32>, vector<8x64xf32> -> vector<8x64xf32>
    %c0_46 = arith.constant 0 : index
    %c0_47 = arith.constant 0 : index
    %67 = vector.load %arg11[%c0_46, %c0_47] : memref<1x64xf32, #tpu.memory_space<vmem>>, vector<1x64xf32>
    %68 = vector.broadcast %67 : vector<1x64xf32> to vector<8x64xf32>
    %69 = arith.addf %66, %68 : vector<8x64xf32>
    %cst_48 = arith.constant 0.000000e+00 : f32
    %70 = vector.broadcast %cst_48 : f32 to vector<8x64xf32>
    %71 = arith.maximumf %69, %70 : vector<8x64xf32>
    %c0_49 = arith.constant 0 : index
    %c0_50 = arith.constant 0 : index
    %72 = vector.load %arg12[%c0_49, %c0_50] : memref<64x32xf32, #tpu.memory_space<vmem>>, vector<64x32xf32>
    %cst_51 = arith.constant dense<0.000000e+00> : vector<8x32xf32>
    %73 = tpu.matmul %71, %72, %cst_51 {dimension_numbers = #tpu.dot_dimension_numbers<[1], [0], [0], [1], [0, 0, 1, 1], [], []>} : vector<8x64xf32>, vector<64x32xf32>, vector<8x32xf32> -> vector<8x32xf32>
    %c0_52 = arith.constant 0 : index
    %c0_53 = arith.constant 0 : index
    %74 = vector.load %arg13[%c0_52, %c0_53] : memref<1x32xf32, #tpu.memory_space<vmem>>, vector<1x32xf32>
    %75 = vector.broadcast %74 : vector<1x32xf32> to vector<8x32xf32>
    %76 = arith.addf %73, %75 : vector<8x32xf32>
    %77 = arith.addf %76, %64 : vector<8x32xf32>
    %c0_54 = arith.constant 0 : index
    %c0_55 = arith.constant 0 : index
    %78 = vector.load %arg18[%c0_54, %c0_55] : memref<1x32xf32, #tpu.memory_space<vmem>>, vector<1x32xf32>
    %c0_56 = arith.constant 0 : index
    %c0_57 = arith.constant 0 : index
    %79 = vector.load %arg19[%c0_56, %c0_57] : memref<1x32xf32, #tpu.memory_space<vmem>>, vector<1x32xf32>
    %cst_58 = arith.constant dense<0.000000e+00> : vector<8xf32>
    %80 = vector.multi_reduction <add>, %77, %cst_58 [1] : vector<8x32xf32> to vector<8xf32>
    %81 = vector.shape_cast %80 : vector<8xf32> to vector<8x1xf32>
    %cst_59 = arith.constant 3.200000e+01 : f32
    %82 = vector.broadcast %cst_59 : f32 to vector<8x1xf32>
    %83 = arith.divf %81, %82 : vector<8x1xf32>
    %84 = vector.broadcast %83 : vector<8x1xf32> to vector<8x32xf32>
    %85 = arith.subf %77, %84 : vector<8x32xf32>
    %86 = arith.mulf %85, %85 : vector<8x32xf32>
    %cst_60 = arith.constant dense<0.000000e+00> : vector<8xf32>
    %87 = vector.multi_reduction <add>, %86, %cst_60 [1] : vector<8x32xf32> to vector<8xf32>
    %88 = vector.shape_cast %87 : vector<8xf32> to vector<8x1xf32>
    %cst_61 = arith.constant 3.200000e+01 : f32
    %89 = vector.broadcast %cst_61 : f32 to vector<8x1xf32>
    %90 = arith.divf %88, %89 : vector<8x1xf32>
    %91 = vector.broadcast %83 : vector<8x1xf32> to vector<8x32xf32>
    %92 = arith.subf %77, %91 : vector<8x32xf32>
    %cst_62 = arith.constant 9.99999974E-6 : f32
    %93 = vector.broadcast %cst_62 : f32 to vector<8x1xf32>
    %94 = arith.addf %90, %93 : vector<8x1xf32>
    %95 = math.rsqrt %94 : vector<8x1xf32>
    %96 = vector.broadcast %95 : vector<8x1xf32> to vector<8x32xf32>
    %97 = arith.mulf %92, %96 : vector<8x32xf32>
    %98 = vector.broadcast %78 : vector<1x32xf32> to vector<8x32xf32>
    %99 = arith.mulf %97, %98 : vector<8x32xf32>
    %100 = vector.broadcast %79 : vector<1x32xf32> to vector<8x32xf32>
    %101 = arith.addf %99, %100 : vector<8x32xf32>
    %c0_63 = arith.constant 0 : index
    %c0_64 = arith.constant 0 : index
    %102 = vector.load %arg14[%c0_63, %c0_64] : memref<32x32xf32, #tpu.memory_space<vmem>>, vector<32x32xf32>
    %cst_65 = arith.constant dense<0.000000e+00> : vector<8x32xf32>
    %103 = tpu.matmul %101, %102, %cst_65 {dimension_numbers = #tpu.dot_dimension_numbers<[1], [0], [0], [1], [0, 0, 1, 1], [], []>} : vector<8x32xf32>, vector<32x32xf32>, vector<8x32xf32> -> vector<8x32xf32>
    %c0_66 = arith.constant 0 : index
    %c0_67 = arith.constant 0 : index
    %104 = vector.load %arg15[%c0_66, %c0_67] : memref<1x32xf32, #tpu.memory_space<vmem>>, vector<1x32xf32>
    %105 = vector.broadcast %104 : vector<1x32xf32> to vector<8x32xf32>
    %106 = arith.addf %103, %105 : vector<8x32xf32>
    %107 = arith.addf %106, %101 : vector<8x32xf32>
    %c0_68 = arith.constant 0 : index
    %c0_69 = arith.constant 0 : index
    %108 = vector.load %arg20[%c0_68, %c0_69] : memref<1x32xf32, #tpu.memory_space<vmem>>, vector<1x32xf32>
    %c0_70 = arith.constant 0 : index
    %c0_71 = arith.constant 0 : index
    %109 = vector.load %arg21[%c0_70, %c0_71] : memref<1x32xf32, #tpu.memory_space<vmem>>, vector<1x32xf32>
    %cst_72 = arith.constant dense<0.000000e+00> : vector<8xf32>
    %110 = vector.multi_reduction <add>, %107, %cst_72 [1] : vector<8x32xf32> to vector<8xf32>
    %111 = vector.shape_cast %110 : vector<8xf32> to vector<8x1xf32>
    %cst_73 = arith.constant 3.200000e+01 : f32
    %112 = vector.broadcast %cst_73 : f32 to vector<8x1xf32>
    %113 = arith.divf %111, %112 : vector<8x1xf32>
    %114 = vector.broadcast %113 : vector<8x1xf32> to vector<8x32xf32>
    %115 = arith.subf %107, %114 : vector<8x32xf32>
    %116 = arith.mulf %115, %115 : vector<8x32xf32>
    %cst_74 = arith.constant dense<0.000000e+00> : vector<8xf32>
    %117 = vector.multi_reduction <add>, %116, %cst_74 [1] : vector<8x32xf32> to vector<8xf32>
    %118 = vector.shape_cast %117 : vector<8xf32> to vector<8x1xf32>
    %cst_75 = arith.constant 3.200000e+01 : f32
    %119 = vector.broadcast %cst_75 : f32 to vector<8x1xf32>
    %120 = arith.divf %118, %119 : vector<8x1xf32>
    %121 = vector.broadcast %113 : vector<8x1xf32> to vector<8x32xf32>
    %122 = arith.subf %107, %121 : vector<8x32xf32>
    %cst_76 = arith.constant 9.99999974E-6 : f32
    %123 = vector.broadcast %cst_76 : f32 to vector<8x1xf32>
    %124 = arith.addf %120, %123 : vector<8x1xf32>
    %125 = math.rsqrt %124 : vector<8x1xf32>
    %126 = vector.broadcast %125 : vector<8x1xf32> to vector<8x32xf32>
    %127 = arith.mulf %122, %126 : vector<8x32xf32>
    %128 = vector.broadcast %108 : vector<1x32xf32> to vector<8x32xf32>
    %129 = arith.mulf %127, %128 : vector<8x32xf32>
    %130 = vector.broadcast %109 : vector<1x32xf32> to vector<8x32xf32>
    %131 = arith.addf %129, %130 : vector<8x32xf32>
    %c0_77 = arith.constant 0 : index
    %c0_78 = arith.constant 0 : index
    %c0_79 = arith.constant 0 : index
    %132 = vector.load %arg22[%c0_77, %c0_78, %c0_79] : memref<1x8x32xf32, #tpu.memory_space<vmem>>, vector<1x8x32xf32>
    %133 = vector.shape_cast %132 : vector<1x8x32xf32> to vector<8x32xf32>
    %134 = vector.shape_cast %131 : vector<8x32xf32> to vector<1x8x32xf32>
    tpu.vector_store %arg22[%c0_77, %c0_78, %c0_79], %134 {strides = array<i32>} : memref<1x8x32xf32, #tpu.memory_space<vmem>>, vector<1x8x32xf32>,
    return
  }
  func.func @transform_0(%arg0: i32) -> (i32, i32, i32) {
    %c0_i32 = arith.constant 0 : i32
    %c0_i32_0 = arith.constant 0 : i32
    %c0_i32_1 = arith.constant 0 : i32
    return %arg0, %c0_i32, %c0_i32_0 : i32, i32, i32
  }
  func.func @transform_1(%arg0: i32) -> (i32, i32, i32) {
    %c0_i32 = arith.constant 0 : i32
    %c0_i32_0 = arith.constant 0 : i32
    %c0_i32_1 = arith.constant 0 : i32
    %c0_i32_2 = arith.constant 0 : i32
    return %c0_i32, %c0_i32_0, %c0_i32_1 : i32, i32, i32
  }
  func.func @transform_2(%arg0: i32) -> (i32, i32, i32) {
    %c0_i32 = arith.constant 0 : i32
    %c0_i32_0 = arith.constant 0 : i32
    %c0_i32_1 = arith.constant 0 : i32
    %c0_i32_2 = arith.constant 0 : i32
    return %c0_i32, %c0_i32_0, %c0_i32_1 : i32, i32, i32
  }
  func.func @transform_3(%arg0: i32) -> (i32, i32, i32) {
    %c0_i32 = arith.constant 0 : i32
    %c0_i32_0 = arith.constant 0 : i32
    %c0_i32_1 = arith.constant 0 : i32
    %c0_i32_2 = arith.constant 0 : i32
    return %c0_i32, %c0_i32_0, %c0_i32_1 : i32, i32, i32
  }
  func.func @transform_4(%arg0: i32) -> (i32, i32, i32) {
    %c0_i32 = arith.constant 0 : i32
    %c0_i32_0 = arith.constant 0 : i32
    %c0_i32_1 = arith.constant 0 : i32
    %c0_i32_2 = arith.constant 0 : i32
    return %c0_i32, %c0_i32_0, %c0_i32_1 : i32, i32, i32
  }
  func.func @transform_5(%arg0: i32) -> (i32, i32, i32) {
    %c0_i32 = arith.constant 0 : i32
    %c0_i32_0 = arith.constant 0 : i32
    %c0_i32_1 = arith.constant 0 : i32
    %c0_i32_2 = arith.constant 0 : i32
    return %c0_i32, %c0_i32_0, %c0_i32_1 : i32, i32, i32
  }
  func.func @transform_6(%arg0: i32) -> (i32, i32, i32) {
    %c0_i32 = arith.constant 0 : i32
    %c0_i32_0 = arith.constant 0 : i32
    %c0_i32_1 = arith.constant 0 : i32
    %c0_i32_2 = arith.constant 0 : i32
    return %c0_i32, %c0_i32_0, %c0_i32_1 : i32, i32, i32
  }
  func.func @transform_7(%arg0: i32) -> (i32, i32, i32) {
    %c0_i32 = arith.constant 0 : i32
    %c0_i32_0 = arith.constant 0 : i32
    %c0_i32_1 = arith.constant 0 : i32
    %c0_i32_2 = arith.constant 0 : i32
    return %c0_i32, %c0_i32_0, %c0_i32_1 : i32, i32, i32
  }
  func.func @transform_8(%arg0: i32) -> (i32, i32) {
    %c0_i32 = arith.constant 0 : i32
    %c0_i32_0 = arith.constant 0 : i32
    %c0_i32_1 = arith.constant 0 : i32
    return %c0_i32, %c0_i32_0 : i32, i32
  }
  func.func @transform_9(%arg0: i32) -> (i32, i32) {
    %c0_i32 = arith.constant 0 : i32
    %c0_i32_0 = arith.constant 0 : i32
    %c0_i32_1 = arith.constant 0 : i32
    return %c0_i32, %c0_i32_0 : i32, i32
  }
  func.func @transform_10(%arg0: i32) -> (i32, i32) {
    %c0_i32 = arith.constant 0 : i32
    %c0_i32_0 = arith.constant 0 : i32
    %c0_i32_1 = arith.constant 0 : i32
    return %c0_i32, %c0_i32_0 : i32, i32
  }
  func.func @transform_11(%arg0: i32) -> (i32, i32) {
    %c0_i32 = arith.constant 0 : i32
    %c0_i32_0 = arith.constant 0 : i32
    %c0_i32_1 = arith.constant 0 : i32
    return %c0_i32, %c0_i32_0 : i32, i32
  }
  func.func @transform_12(%arg0: i32) -> (i32, i32) {
    %c0_i32 = arith.constant 0 : i32
    %c0_i32_0 = arith.constant 0 : i32
    %c0_i32_1 = arith.constant 0 : i32
    return %c0_i32, %c0_i32_0 : i32, i32
  }
  func.func @transform_13(%arg0: i32) -> (i32, i32) {
    %c0_i32 = arith.constant 0 : i32
    %c0_i32_0 = arith.constant 0 : i32
    %c0_i32_1 = arith.constant 0 : i32
    return %c0_i32, %c0_i32_0 : i32, i32
  }
  func.func @transform_14(%arg0: i32) -> (i32, i32) {
    %c0_i32 = arith.constant 0 : i32
    %c0_i32_0 = arith.constant 0 : i32
    %c0_i32_1 = arith.constant 0 : i32
    return %c0_i32, %c0_i32_0 : i32, i32
  }
  func.func @transform_15(%arg0: i32) -> (i32, i32) {
    %c0_i32 = arith.constant 0 : i32
    %c0_i32_0 = arith.constant 0 : i32
    %c0_i32_1 = arith.constant 0 : i32
    return %c0_i32, %c0_i32_0 : i32, i32
  }
  func.func @transform_16(%arg0: i32) -> (i32, i32) {
    %c0_i32 = arith.constant 0 : i32
    %c0_i32_0 = arith.constant 0 : i32
    %c0_i32_1 = arith.constant 0 : i32
    return %c0_i32, %c0_i32_0 : i32, i32
  }
  func.func @transform_17(%arg0: i32) -> (i32, i32) {
    %c0_i32 = arith.constant 0 : i32
    %c0_i32_0 = arith.constant 0 : i32
    %c0_i32_1 = arith.constant 0 : i32
    return %c0_i32, %c0_i32_0 : i32, i32
  }
  func.func @transform_18(%arg0: i32) -> (i32, i32) {
    %c0_i32 = arith.constant 0 : i32
    %c0_i32_0 = arith.constant 0 : i32
    %c0_i32_1 = arith.constant 0 : i32
    return %c0_i32, %c0_i32_0 : i32, i32
  }
  func.func @transform_19(%arg0: i32) -> (i32, i32) {
    %c0_i32 = arith.constant 0 : i32
    %c0_i32_0 = arith.constant 0 : i32
    %c0_i32_1 = arith.constant 0 : i32
    return %c0_i32, %c0_i32_0 : i32, i32
  }
  func.func @transform_20(%arg0: i32) -> (i32, i32) {
    %c0_i32 = arith.constant 0 : i32
    %c0_i32_0 = arith.constant 0 : i32
    %c0_i32_1 = arith.constant 0 : i32
    return %c0_i32, %c0_i32_0 : i32, i32
  }
  func.func @transform_21(%arg0: i32) -> (i32, i32, i32) {
    %c0_i32 = arith.constant 0 : i32
    %c0_i32_0 = arith.constant 0 : i32
    %c0_i32_1 = arith.constant 0 : i32
    return %arg0, %c0_i32, %c0_i32_0 : i32, i32, i32
  }
}

</mosaic_0001>

<bundles_post_ra>
// kernel: tpu_custom_call.1
= control target key start
LH: loop header
LB: loop body
LE: loop exit
PB: predicated region body
PF: predicated region fallthrough
CT: control target
= control target key end

     0   :  { %s4202_s0 = inlined_call_operand.vmem [shape: f32[2,8,32], index: 0, kind: input, shape index: {}]   ;;  %s4203_s1 = inlined_call_operand.vmem [shape: f32[4,32,8], index: 1, kind: input, shape index: {}]   ;;  %s4204_s2 = inlined_call_operand.vmem [shape: f32[4,32,8], index: 2, kind: input, shape index: {}]   ;;  %s4205_s3 = inlined_call_operand.vmem [shape: f32[4,32,8], index: 3, kind: input, shape index: {}]   ;;  %s4206_s4 = inlined_call_operand.vmem [shape: f32[4,1,8], index: 4, kind: input, shape index: {}]   ;;  %s4207_s5 = inlined_call_operand.vmem [shape: f32[4,1,8], index: 5, kind: input, shape index: {}]   ;;  %s4208_s6 = inlined_call_operand.vmem [shape: f32[4,1,8], index: 6, kind: input, shape index: {}]   ;;  %s4209_s7 = inlined_call_operand.vmem [shape: f32[4,8,32], index: 7, kind: input, shape index: {}]   ;;  %s4210_s8 = inlined_call_operand.vmem [shape: f32[1,32], index: 8, kind: input, shape index: {}]   ;;  %s4211_s9 = inlined_call_operand.vmem [shape: f32[32,64], index: 9, kind: input, shape index: {}]   ;;  %s4212_s10 = inlined_call_operand.vmem [shape: f32[1,64], index: 10, kind: input, shape index: {}]   ;;  %s4213_s11 = inlined_call_operand.vmem [shape: f32[64,32], index: 11, kind: input, shape index: {}]   ;;  %s4214_s12 = inlined_call_operand.vmem [shape: f32[1,32], index: 12, kind: input, shape index: {}]   ;;  %s4215_s13 = inlined_call_operand.vmem [shape: f32[32,32], index: 13, kind: input, shape index: {}]   ;;  %s4216_s14 = inlined_call_operand.vmem [shape: f32[1,32], index: 14, kind: input, shape index: {}]   ;;  %s4217_s15 = inlined_call_operand.vmem [shape: f32[1,32], index: 15, kind: input, shape index: {}]   ;;  %s4218_s16 = inlined_call_operand.vmem [shape: f32[1,32], index: 16, kind: input, shape index: {}]   ;;  %s4219_s17 = inlined_call_operand.vmem [shape: f32[1,32], index: 17, kind: input, shape index: {}]   ;;  %s4220_s18 = inlined_call_operand.vmem [shape: f32[1,32], index: 18, kind: input, shape index: {}]   ;;  %s4221_s19 = inlined_call_operand.vmem [shape: f32[1,32], index: 19, kind: input, shape index: {}]   ;;  %s4222_s20 = inlined_call_operand.vmem [shape: f32[1,32], index: 20, kind: input, shape index: {}]   ;;  %s4223_s21 = inlined_call_operand.hbm [shape: f32[2,8,32], index: 21, kind: output, shape index: {}]  }
   0x1   :  { %4237 = sst [smem:[#allocation11_spill]] %s4202_s0 }
   0x2   :  { %4238 = sst [smem:[#allocation12_spill]] %s4203_s1 }
   0x3   :  { %4239 = sst [smem:[#allocation13_spill]] %s4204_s2 }
   0x4   :  { %4240 = sst [smem:[#allocation14_spill]] %s4205_s3 }
   0x5   :  { %4241 = sst [smem:[#allocation15_spill]] %s4206_s4 }
   0x6   :  { %4242 = sst [smem:[#allocation16_spill]] %s4207_s5 }
   0x7   :  { %4243 = sst [smem:[#allocation17_spill]] %s4208_s6 }
   0x8   :  { %4244 = sst [smem:[#allocation18_spill]] %s4209_s7 }
   0x9   :  { %4245 = sst [smem:[#allocation19_spill]] %s4210_s8 }
   0xa   :  { %4246 = sst [smem:[#allocation20_spill]] %s4211_s9 }
   0xb   :  { %26 = vsyncpa [#allocation3], 0 }
   0xc   :  { %28 = vsyncpa [#allocation3 + $0x1], 0  ;;  %s3645_s2 = smov 0   ;;  %s3647_s25 = smov 0  }
   0xd   :  { %s3649_s26 = smov 0   ;;  %s3651_s27 = smov 0  }
   0xe LB: > { %4247 = sst [smem:[#allocation5_spill]] %s3518_s2  ;;  %s3666_s3 = sadd.s32 4294967295, %s3530_s27   ;;  %s3530_s27 = sphi %s3651_s27, %s4269_s27   ;;  %s3526_s26 = sphi %s3649_s26, %s4271_s26   ;;  %s3522_s25 = sphi %s3647_s25, %s4273_s25   ;;  %s3518_s2 = sphi %s3645_s2, %s4272_s2  }
   0xf   : > { %4248 = sst [smem:[#allocation6_spill]] %s3526_s26  ;;  %s3008_s28 = sadd.s32 4294967294, %s3530_s27  }
  0x10   : > { %4249 = sst [smem:[#allocation7_spill]] %s3530_s27  ;;  %s3670_s29 = sadd.s32 1, %s3530_s27  }
  0x11   : > { %4250 = sst [smem:[#allocation8_spill]] %s3670_s29  ;;  %s487_s0 = sadd.s32 1, %s3526_s26 }
  0x12   : > { %s484_s4 = ssub.s32 %s3530_s27, %s3670_s29  ;;  %p497_p0 = scmp.ne.s32.totalorder %s3526_s26, %s3522_s25 }
  0x13   : > { %p485_p1 = scmp.eq.s32.totalorder %s484_s4, 0  ;;  %p498_p2 = scmp.eq.s32.totalorder %s3666_s3, 1 }
  0x14   : > { %p503_p3 = scmp.ne.s32.totalorder %s3522_s25, %s3518_s2  ;;  %p504_p4 = scmp.eq.s32.totalorder %s3008_s28, 1 }
  0x15   : > { %s3681_s30 = scalar_select %p485_p1, %s3526_s26, %s487_s0  }
  0x16   : > { %p3683_p5 = por %p498_p2, %p497_p0  ;;  %p3687_p6 = por %p504_p4, %p503_p3 }
  0x17   : > { %4251 = sst [smem:[#allocation9_spill]] %s3681_s30  ;;  %p3011_p7 = scmp.ge.s32.totalorder %s3530_s27, 1 }
  0x18   : > { %s4253_s22 = scalar_select %p3687_p6, 1, 0 }
  0x19   : > { %p589_p8 = scmp.lt.s32.totalorder %s3530_s27, 3 }
  0x1a   : > { %4254 = sst [smem:[#allocation10_spill]] %s4253_s22 }
  0x1b   : > { %p590_p9 = pnand %p3011_p7, %p589_p8 }
  0x1c   : > { %s4255_s24 = sld [smem:[#allocation12_spill]] (!%p590_p9)  ;;  %p648_p10 = scmp.lt.s32.totalorder (!%p590_p9), %s3666_s3, 1 }
  0x1d   : > { %593 = sbr.rel (%p590_p9) target bundleno = 2704 (0xa90), region = 104  ;;  %s4256_s27 = sld [smem:[#allocation11_spill]] (!%p590_p9) }
  0x1e   : > { %s4257_s4 = sld [smem:[#allocation13_spill]] (!%p590_p9)  ;;  %s3068_s28 = sshll.u32 (!%p590_p9), %s3666_s3, 7 }
  0x1f   : > { %s4258_s22 = sld [smem:[#allocation14_spill]] (!%p590_p9) }
  0x20   : > { %s4259_s26 = sld [smem:[#allocation16_spill]] (!%p590_p9) }
  0x21   : > { %s4262_s6 = sld [smem:[#allocation17_spill]] (!%p590_p9) }
  0x22   : > { %v656_v0 = vld [vmem:[%s4255_s24 + $0x18] sm:$0xff]  ;;  %v3532_v2 = vmov 0.0   ;;  %v655_v3 = vld [vmem:[%s4255_s24 + $0x10] sm:$0xff]  ;;  %s649_s23 = scalar_select %p648_p10, %s3666_s3, 1  ;;  %v654_v5 = vld [vmem:[%s4255_s24 + $0x8] sm:$0xff]  ;;  %vm697_vm0 = vcmask 261120  }
  0x23   : > { %v660_v1 = vld [vmem:[%s4255_s24 + $0x38] sm:$0xff]  ;;  %3174 = vmatprep.subr.mxu0 %v3532_v2  ;;  %3185 = vmatprep.subr.mxu1 %v3532_v2  ;;  %v659_v4 = vld [vmem:[%s4255_s24 + $0x30] sm:$0xff]  ;;  %v658_v6 = vld [vmem:[%s4255_s24 + $0x28] sm:$0xff]  ;;  %vm3533_vm1 = vmmov 0   ;;  %vm1629_vm2 = vcmask 64512   ;;  %s4263_s7 = sld [smem:[#allocation18_spill]] }
  0x24   : > { %3175 = vmatpush3.msra.mxu0 %v656_v0  ;;  %3186 = vmatpush3.msra.mxu1 %v660_v1  ;;  %s3013_s30 = sshll.u32 %s649_s23, 3  ;;  %v653_v7 = vld [vmem:[%s4255_s24] sm:$0xff]  ;;  %v664_v10 = vld [vmem:[%s4255_s24 + $0x58] sm:$0xff]  ;;  %v663_v12 = vld [vmem:[%s4255_s24 + $0x50] sm:$0xff]  ;;  %s4261_s23 = sld [smem:[#allocation15_spill]]  ;;  %vm2716_vm3 = vcmask 523264  }
  0x25   : > { %3176 = vmatprep.subr.mxu0 %v3532_v2  ;;  %3187 = vmatprep.subr.mxu1 %v3532_v2  ;;  %s651_s1 = scalar_lea.vmem %s4256_s27, %s3013_s30  ;;  %v657_v8 = vld [vmem:[%s4255_s24 + $0x20] sm:$0xff]  ;;  %v668_v11 = vld [vmem:[%s4255_s24 + $0x78] sm:$0xff]  ;;  %v667_v13 = vld [vmem:[%s4255_s24 + $0x70] sm:$0xff]  ;;  %s4264_s8 = sld [smem:[#allocation19_spill]] }
  0x26   : > { %3177 = vmatpush3.msra.mxu0 %v655_v3  ;;  %3188 = vmatpush3.msra.mxu1 %v659_v4  ;;  %v3728_v9 = vld [vmem:[%s651_s1] sm:$0xff]  ;;  %v662_v14 = vld [vmem:[%s4255_s24 + $0x48] sm:$0xff]  ;;  %v984_v18 = vld [vmem:[%s4257_s4 + $0x18] sm:$0xff]  ;;  %s4260_s29 = smov %s4259_s26  ;;  %s4265_s9 = sld [smem:[#allocation20_spill]] }
  0x27   : > { %3178 = vmatprep.subr.mxu0 %v3532_v2  ;;  %3189 = vmatprep.subr.mxu1 %v3532_v2  ;;  %v666_v15 = vld [vmem:[%s4255_s24 + $0x68] sm:$0xff]  ;;  %v661_v16 = vld [vmem:[%s4255_s24 + $0x40] sm:$0xff]  ;;  %v988_v19 = vld [vmem:[%s4257_s4 + $0x38] sm:$0xff]  ;;  %s3534_s30 = smov [#allocation2]  }
  0x28   : > { %3179 = vmatpush3.msra.mxu0 %v654_v5  ;;  %3190 = vmatpush3.msra.mxu1 %v658_v6  ;;  %v665_v17 = vld [vmem:[%s4255_s24 + $0x60] sm:$0xff]  ;;  %v983_v20 = vld [vmem:[%s4257_s4 + $0x10] sm:$0xff]  ;;  %v982_v22 = vld [vmem:[%s4257_s4 + $0x8] sm:$0xff] }
  0x29   : > { %3180 = vmatprep.subr.mxu0 %v3532_v2  ;;  %3191 = vmatprep.subr.mxu1 %v3532_v2  ;;  %v987_v21 = vld [vmem:[%s4257_s4 + $0x30] sm:$0xff]  ;;  %v986_v23 = vld [vmem:[%s4257_s4 + $0x28] sm:$0xff]  ;;  %v981_v24 = vld [vmem:[%s4257_s4] sm:$0xff] }
  0x2a   : > { %3181 = vmatpush3.msra.mxu0 %v653_v7  ;;  %3182 = vmatprep.mubr.msk.f32.mxu0 %vm3533_vm1, %v3532_v2  ;;  %v985_v25 = vld [vmem:[%s4257_s4 + $0x20] sm:$0xff]  ;;  %v992_v26 = vld [vmem:[%s4257_s4 + $0x58] sm:$0xff]  ;;  %v991_v28 = vld [vmem:[%s4257_s4 + $0x50] sm:$0xff] }
  0x2b   : > { %3192 = vmatpush3.msra.mxu1 %v657_v8  ;;  %3183 = vmatmul.mubr.msk.f32.vlgmr.msra.gmra.mxu0 %vm697_vm0, %v3728_v9  ;;  %v996_v27 = vld [vmem:[%s4257_s4 + $0x78] sm:$0xff]  ;;  %v995_v29 = vld [vmem:[%s4257_s4 + $0x70] sm:$0xff]  ;;  %v990_v30 = vld [vmem:[%s4257_s4 + $0x48] sm:$0xff] }
  0x2c   : > { %3193 = vmatprep.mubr.msk.f32.mxu1 %vm3533_vm1, %v3532_v2  ;;  %3196 = vmatprep.subr.mxu0 %v3532_v2  ;;  %v994_v31 = vld [vmem:[%s4257_s4 + $0x68] sm:$0xff]  ;;  %v989_v32 = vld [vmem:[%s4257_s4 + $0x40] sm:$0xff]  ;;  %v1308_v34 = vld [vmem:[%s4258_s22 + $0x18] sm:$0xff] }
  0x2d   : > { %3207 = vmatprep.subr.mxu1 %v3532_v2  ;;  %3194 = vmatmul.mubr.msk.f32.vlgmr.msra.gmra.mxu1 %vm697_vm0, %v3728_v9  ;;  %v993_v33 = vld [vmem:[%s4257_s4 + $0x60] sm:$0xff]  ;;  %v1312_v35 = vld [vmem:[%s4258_s22 + $0x38] sm:$0xff]  ;;  %v1307_v36 = vld [vmem:[%s4258_s22 + $0x10] sm:$0xff]  ;;  %s645_s4 = sand.u32 1, %s3522_s25  }
  0x2e   : > { %3197 = vmatpush3.msra.mxu0 %v664_v10  ;;  %3208 = vmatpush3.msra.mxu1 %v668_v11  ;;  %v1311_v37 = vld [vmem:[%s4258_s22 + $0x30] sm:$0xff]  ;;  %v1306_v38 = vld [vmem:[%s4258_s22 + $0x8] sm:$0xff]  ;;  %v1305_v40 = vld [vmem:[%s4258_s22] sm:$0xff] }
  0x2f   : > { %3198 = vmatprep.subr.mxu0 %v3532_v2  ;;  %3209 = vmatprep.subr.mxu1 %v3532_v2  ;;  %v1310_v39 = vld [vmem:[%s4258_s22 + $0x28] sm:$0xff]  ;;  %v1309_v41 = vld [vmem:[%s4258_s22 + $0x20] sm:$0xff]  ;;  %v1316_v42 = vld [vmem:[%s4258_s22 + $0x58] sm:$0xff] }
  0x30   : > { %3199 = vmatpush3.msra.mxu0 %v663_v12  ;;  %3210 = vmatpush3.msra.mxu1 %v667_v13  ;;  %v1320_v43 = vld [vmem:[%s4258_s22 + $0x78] sm:$0xff]  ;;  %v1315_v44 = vld [vmem:[%s4258_s22 + $0x50] sm:$0xff]  ;;  %v1314_v46 = vld [vmem:[%s4258_s22 + $0x48] sm:$0xff] }
  0x31   : > { %3200 = vmatprep.subr.mxu0 %v3532_v2  ;;  %3211 = vmatprep.subr.mxu1 %v3532_v2  ;;  %v1319_v45 = vld [vmem:[%s4258_s22 + $0x70] sm:$0xff]  ;;  %v1318_v47 = vld [vmem:[%s4258_s22 + $0x68] sm:$0xff]  ;;  %v1313_v48 = vld [vmem:[%s4258_s22 + $0x40] sm:$0xff] }
  0x32   : > { %3201 = vmatpush3.msra.mxu0 %v662_v14  ;;  %3212 = vmatpush3.msra.mxu1 %v666_v15  ;;  %v1317_v49 = vld [vmem:[%s4258_s22 + $0x60] sm:$0xff]  ;;  %s3012_s22 = sshll.u32 %s645_s4, 3 }
  0x33   : > { %3202 = vmatprep.subr.mxu0 %v3532_v2  ;;  %3213 = vmatprep.subr.mxu1 %v3532_v2  ;;  %v3022_v58 = vld [vmem:[%s4259_s26] ss:$0 sm:$0xff]  ;;  %v3023_v59 = vld [vmem:[%s4260_s29 + $0x1] ss:$0 sm:$0xff]  ;;  %v3024_v7 = vld [vmem:[%s4260_s29 + $0x2] ss:$0 sm:$0xff] }
  0x34   : > { %3203 = vmatpush3.msra.mxu0 %v661_v16  ;;  %3204 = vmatprep.mubr.msk.f32.mxu0 %vm3533_vm1, %v3532_v2  ;;  %v3014_v62 = vld [vmem:[%s4261_s23] ss:$0 sm:$0xff]  ;;  %v3015_v63 = vld [vmem:[%s4261_s23 + $0x1] ss:$0 sm:$0xff]  ;;  %v3025_v8 = vld [vmem:[%s4260_s29 + $0x3] ss:$0 sm:$0xff] }
  0x35   : > { %3214 = vmatpush3.msra.mxu1 %v665_v17  ;;  %3205 = vmatmul.mubr.msk.f32.vlgmr.msra.gmra.mxu0 %vm697_vm0, %v3728_v9  ;;  %v3016_v12 = vld [vmem:[%s4261_s23 + $0x2] ss:$0 sm:$0xff]  ;;  %v3017_v13 = vld [vmem:[%s4261_s23 + $0x3] ss:$0 sm:$0xff]  ;;  %s647_s2 = scalar_lea.vmem [#allocation2], %s3012_s22  ;;  %s3474_s26 = sshll.u32 %s3534_s30, 4  ;;  %s3475_s26 = int_to_ptr.vmem [resolvable:$false] %s3474_s26 }
  0x36   : > { %3215 = vmatprep.mubr.msk.f32.mxu1 %vm3533_vm1, %v3532_v2  ;;  %3218 = vmatprep.subr.mxu0 %v3532_v2  ;;  %s2949_s27 = sshll.u32 %s647_s2, 4  ;;  %s3476_s3 = scalar_lea.vmem %s3475_s26, 256  ;;  %s2950_s27 = int_to_ptr.vmem [resolvable:$true] %s2949_s27 }
  0x37   : > { %3229 = vmatprep.subr.mxu1 %v3532_v2  ;;  %3216 = vmatmul.mubr.msk.f32.vlgmr.msra.gmra.mxu1 %vm697_vm0, %v3728_v9  ;;  %s3470_s0 = scalar_lea.vmem %s2950_s27, 128  ;;  %p3477_p0 = scmp.lt.s32.totalorder %s2950_s27, %s3475_s26 }
  0x38   : > { %3219 = vmatpush3.msra.mxu0 %v984_v18  ;;  %3230 = vmatpush3.msra.mxu1 %v988_v19  ;;  %p3471_p11 = scmp.ne.s32.totalorder %s2950_s27, %s3470_s0  ;;  %p3478_p1 = scmp.lt.s32.totalorder %s3476_s3, %s3470_s0 }
  0x39   : > { %3220 = vmatprep.subr.mxu0 %v3532_v2  ;;  %3231 = vmatprep.subr.mxu1 %v3532_v2 }
  0x3a   : > { %3221 = vmatpush3.msra.mxu0 %v983_v20  ;;  %3232 = vmatpush3.msra.mxu1 %v987_v21  ;;  %v3030_v20 = vld [vmem:[%s4262_s6] ss:$0 sm:$0xff]  ;;  %v3031_v21 = vld [vmem:[%s4262_s6 + $0x1] ss:$0 sm:$0xff]  ;;  %p3472_p12 = pnand %p3471_p11, %p3683_p5  ;;  %p3479_p2 = por %p3478_p1, %p3477_p0 }
  0x3b   : > { %3222 = vmatprep.subr.mxu0 %v3532_v2  ;;  %3233 = vmatprep.subr.mxu1 %v3532_v2 }
  0x3c   : > { %3223 = vmatpush3.msra.mxu0 %v982_v22  ;;  %3234 = vmatpush3.msra.mxu1 %v986_v23  ;;  %p3473_p13 = pneg %p3472_p12 }
  0x3d   : > { %3224 = vmatprep.subr.mxu0 %v3532_v2  ;;  %3235 = vmatprep.subr.mxu1 %v3532_v2 }
  0x3e   : > { %3225 = vmatpush3.msra.mxu0 %v981_v24  ;;  %3226 = vmatprep.mubr.msk.f32.mxu0 %vm3533_vm1, %v3532_v2  ;;  %p3480_p3 = pnand %p3479_p2, %p3473_p13 }
  0x3f   : > { %3236 = vmatpush3.msra.mxu1 %v985_v25  ;;  %3237 = vmatprep.mubr.msk.f32.mxu1 %vm3533_vm1, %v3532_v2 }
  0x40   : > { %3227 = vmatmul.mubr.msk.f32.vlgmr.msra.gmra.mxu0 %vm697_vm0, %v3728_v9  ;;  %3238 = vmatmul.mubr.msk.f32.vlgmr.msra.gmra.mxu1 %vm697_vm0, %v3728_v9 }
  0x41   : > { %3240 = vmatprep.subr.mxu0 %v3532_v2  ;;  %3251 = vmatprep.subr.mxu1 %v3532_v2 }
  0x42   : > { %3241 = vmatpush3.msra.mxu0 %v992_v26  ;;  %3252 = vmatpush3.msra.mxu1 %v996_v27 }
  0x43   : > { %3242 = vmatprep.subr.mxu0 %v3532_v2  ;;  %3253 = vmatprep.subr.mxu1 %v3532_v2 }
  0x44   : > { %3243 = vmatpush3.msra.mxu0 %v991_v28  ;;  %3254 = vmatpush3.msra.mxu1 %v995_v29 }
  0x45   : > { %3244 = vmatprep.subr.mxu0 %v3532_v2  ;;  %3255 = vmatprep.subr.mxu1 %v3532_v2 }
  0x46   : > { %3245 = vmatpush3.msra.mxu0 %v990_v30  ;;  %3256 = vmatpush3.msra.mxu1 %v994_v31 }
  0x47   : > { %3246 = vmatprep.subr.mxu0 %v3532_v2  ;;  %3257 = vmatprep.subr.mxu1 %v3532_v2 }
  0x48   : > { %3247 = vmatpush3.msra.mxu0 %v989_v32  ;;  %3248 = vmatprep.mubr.msk.f32.mxu0 %vm3533_vm1, %v3532_v2 }
  0x49   : > { %3258 = vmatpush3.msra.mxu1 %v993_v33  ;;  %3259 = vmatprep.mubr.msk.f32.mxu1 %vm3533_vm1, %v3532_v2 }
  0x4a   : > { %3249 = vmatmul.mubr.msk.f32.vlgmr.msra.gmra.mxu0 %vm697_vm0, %v3728_v9  ;;  %3260 = vmatmul.mubr.msk.f32.vlgmr.msra.gmra.mxu1 %vm697_vm0, %v3728_v9 }
  0x4b   : > { %3262 = vmatprep.subr.mxu0 %v3532_v2  ;;  %3273 = vmatprep.subr.mxu1 %v3532_v2 }
  0x4c   : > { %3270 = vmatprep.mubr.msk.f32.mxu0 %vm3533_vm1, %v3532_v2  ;;  %3281 = vmatprep.mubr.msk.f32.mxu1 %vm3533_vm1, %v3532_v2 }
  0x4d   : > { %3263 = vmatpush3.msra.mxu0 %v1308_v34  ;;  %3274 = vmatpush3.msra.mxu1 %v1312_v35 }
  0x4e   : > { %3264 = vmatprep.subr.mxu0 %v3532_v2  ;;  %3275 = vmatprep.subr.mxu1 %v3532_v2 }
  0x4f   : > { %3265 = vmatpush3.msra.mxu0 %v1307_v36  ;;  %3276 = vmatpush3.msra.mxu1 %v1311_v37 }
  0x50   : > { %3266 = vmatprep.subr.mxu0 %v3532_v2  ;;  %3277 = vmatprep.subr.mxu1 %v3532_v2 }
  0x51   : > { %3267 = vmatpush3.msra.mxu0 %v1306_v38  ;;  %3278 = vmatpush3.msra.mxu1 %v1310_v39 }
  0x52   : > { %3268 = vmatprep.subr.mxu0 %v3532_v2  ;;  %3279 = vmatprep.subr.mxu1 %v3532_v2 }
  0x53   : > { %3269 = vmatpush3.msra.mxu0 %v1305_v40  ;;  %3280 = vmatpush3.msra.mxu1 %v1309_v41 }
  0x54   : > { %3284 = vmatprep.subr.mxu0 %v3532_v2  ;;  %3295 = vmatprep.subr.mxu1 %v3532_v2 }
  0x55   : > { %3271 = vmatmul.mubr.msk.f32.vlgmr.msra.gmra.mxu0 %vm697_vm0, %v3728_v9  ;;  %3282 = vmatmul.mubr.msk.f32.vlgmr.msra.gmra.mxu1 %vm697_vm0, %v3728_v9 }
  0x56   : > { %3285 = vmatpush3.msra.mxu0 %v1316_v42  ;;  %3296 = vmatpush3.msra.mxu1 %v1320_v43 }
  0x57   : > { %3286 = vmatprep.subr.mxu0 %v3532_v2  ;;  %3297 = vmatprep.subr.mxu1 %v3532_v2 }
  0x58   : > { %3287 = vmatpush3.msra.mxu0 %v1315_v44  ;;  %3298 = vmatpush3.msra.mxu1 %v1319_v45 }
  0x59   : > { %3288 = vmatprep.subr.mxu0 %v3532_v2  ;;  %3299 = vmatprep.subr.mxu1 %v3532_v2 }
  0x5a   : > { %3289 = vmatpush3.msra.mxu0 %v1314_v46  ;;  %3300 = vmatpush3.msra.mxu1 %v1318_v47 }
  0x5b   : > { %3290 = vmatprep.subr.mxu0 %v3532_v2  ;;  %3301 = vmatprep.subr.mxu1 %v3532_v2 }
  0x5c   : > { %3292 = vmatprep.mubr.msk.f32.mxu0 %vm3533_vm1, %v3532_v2  ;;  %3303 = vmatprep.mubr.msk.f32.mxu1 %vm3533_vm1, %v3532_v2 }
  0x5d   : > { %3291 = vmatpush3.msra.mxu0 %v1313_v48  ;;  %3302 = vmatpush3.msra.mxu1 %v1317_v49 }
  0x5e   : > { %3293 = vmatmul.mubr.msk.f32.vlgmr.msra.gmra.mxu0 %vm697_vm0, %v3728_v9  ;;  %3304 = vmatmul.mubr.msk.f32.vlgmr.msra.gmra.mxu1 %vm697_vm0, %v3728_v9 }
  0x5f   : > { %3306 = vmatprep.subr.mxu0 %v3532_v2  ;;  %3311 = vmatprep.subr.mxu1 %v3532_v2 }
  0x60   : > { %3308 = vmatprep.mubr.msk.f32.mxu0 %vm3533_vm1, %v3532_v2  ;;  %3313 = vmatprep.mubr.msk.f32.mxu1 %vm3533_vm1, %v3532_v2 }
  0xeb   : > { %v767_v50 = vpop.f32.mrf.mxu0 }
  0xec   : > { %v768_v5 = vadd.f32 %v3014_v62, %v767_v50 }
  0xed   : > { %v3184_v51 = vpop.f32.mrf.mxu0  ;;  %v837_v52 = vpop.f32.mrf.mxu1 }
  0xee   : > { %v838_v6 = vadd.f32 %v3015_v63, %v837_v52 }
  0xef   : > { %v3195_v53 = vpop.f32.mrf.mxu1 }
  0xf5   : > { %v907_v54 = vpop.f32.mrf.mxu0 }
  0xf6   : > { %v908_v18 = vadd.f32 %v3016_v12, %v907_v54 }
  0xf7   : > { %v3206_v55 = vpop.f32.mrf.mxu0  ;;  %v977_v56 = vpop.f32.mrf.mxu1 }
  0xf8   : > { %v978_v19 = vadd.f32 %v3017_v13, %v977_v56 }
  0xf9   : > { %v3217_v57 = vpop.f32.mrf.mxu1 }
 0x100   : > { %v1091_v60 = vpop.f32.mrf.mxu0  ;;  %v1161_v61 = vpop.f32.mrf.mxu1 }
 0x101   : > { %v1092_v0 = vadd.f32 %v3022_v58, %v1091_v60  ;;  %v1162_v1 = vadd.f32 %v3023_v59, %v1161_v61 }
 0x102   : > { %v3228_v3 = vpop.f32.mrf.mxu0  ;;  %v3239_v4 = vpop.f32.mrf.mxu1 }
 0x103   : > { %3307 = vmatpush3.xpose.msk.msra.mxu0 %vm1629_vm2, %v1092_v0  ;;  %3312 = vmatpush3.xpose.msk.msra.mxu1 %vm1629_vm2, %v1162_v1 }
 0x104   : > { %3316 = vmatprep.subr.mxu0 %v3532_v2  ;;  %3321 = vmatprep.subr.mxu1 %v3532_v2 }
 0x106   : > { %3309 = vmatmul.mubr.msk.f32.vlgmr.msra.gmra.mxu0 %vm1629_vm2, %v768_v5  ;;  %3314 = vmatmul.mubr.msk.f32.vlgmr.msra.gmra.mxu1 %vm1629_vm2, %v838_v6 }
 0x107   : > { %3318 = vmatprep.mubr.msk.f32.mxu0 %vm3533_vm1, %v3532_v2  ;;  %3323 = vmatprep.mubr.msk.f32.mxu1 %vm3533_vm1, %v3532_v2 }
 0x10a   : > { %v1231_v10 = vpop.f32.mrf.mxu0  ;;  %v1301_v11 = vpop.f32.mrf.mxu1 }
 0x10b   : > { %v1232_v14 = vadd.f32 %v3024_v7, %v1231_v10  ;;  %v1302_v15 = vadd.f32 %v3025_v8, %v1301_v11  ;;  %v3032_v8 = vld [vmem:[%s4262_s6 + $0x2] ss:$0 sm:$0xff] }
 0x10c   : > { %v3250_v16 = vpop.f32.mrf.mxu0  ;;  %v3261_v17 = vpop.f32.mrf.mxu1 }
 0x10d   : > { %3317 = vmatpush3.xpose.msk.msra.mxu0 %vm1629_vm2, %v1232_v14  ;;  %3322 = vmatpush3.xpose.msk.msra.mxu1 %vm1629_vm2, %v1302_v15  ;;  %v3033_v14 = vld [vmem:[%s4262_s6 + $0x3] ss:$0 sm:$0xff] }
 0x10e   : > { %3326 = vmatprep.subr.mxu0 %v3532_v2  ;;  %3331 = vmatprep.subr.mxu1 %v3532_v2 }
 0x110   : > { %3319 = vmatmul.mubr.msk.f32.vlgmr.msra.gmra.mxu0 %vm1629_vm2, %v908_v18  ;;  %3324 = vmatmul.mubr.msk.f32.vlgmr.msra.gmra.mxu1 %vm1629_vm2, %v978_v19 }
 0x111   : > { %3328 = vmatprep.mubr.msk.f32.mxu0 %vm3533_vm1, %v3532_v2  ;;  %3333 = vmatprep.mubr.msk.f32.mxu1 %vm3533_vm1, %v3532_v2 }
 0x115   : > { %v1415_v22 = vpop.f32.mrf.mxu0  ;;  %v1485_v23 = vpop.f32.mrf.mxu1 }
 0x116   : > { %v1416_v24 = vadd.f32 %v3030_v20, %v1415_v22  ;;  %v1486_v25 = vadd.f32 %v3031_v21, %v1485_v23  ;;  %v2274_v22 = vld [vmem:[%s4263_s7] sm:$0xff]  ;;  %v2275_v23 = vld [vmem:[%s4263_s7 + $0x8] sm:$0xff] }
 0x117   : > { %v3272_v26 = vpop.f32.mrf.mxu0  ;;  %v3283_v27 = vpop.f32.mrf.mxu1 }
 0x118   : > { %3327 = vmatpush3.msra.mxu0 %v1416_v24  ;;  %3332 = vmatpush3.msra.mxu1 %v1486_v25  ;;  %v2276_v24 = vld [vmem:[%s4263_s7 + $0x10] sm:$0xff]  ;;  %v2277_v27 = vld [vmem:[%s4263_s7 + $0x18] sm:$0xff] }
 0x119   : > { %3336 = vmatprep.subr.mxu0 %v3532_v2  ;;  %3341 = vmatprep.subr.mxu1 %v3532_v2 }
 0x11e   : > { %v3998_v28 = vpop.f32.mrf.mxu0  ;;  %v4000_v29 = vpop.f32.mrf.mxu1 }
 0x11f   : > { %v1556_v13 = vadd.f32 %v3032_v8, %v3998_v28  ;;  %v1626_v17 = vadd.f32 %v3033_v14, %v4000_v29  ;;  %v2702_v14 = vld [vmem:[%s4213_s11 + $0x8] sm:$0xff] }
 0x120   : > { %v3294_v30 = vpop.f32.mrf.mxu0  ;;  %v3305_v31 = vpop.f32.mrf.mxu1 }
 0x1c6   : > { %v1702_v32 = vpop.f32.mrf.mxu0  ;;  %v1778_v33 = vpop.f32.mrf.mxu1 }
 0x1c7   : > { %v1934_v34 = vmul.f32 0.35355338, %v1702_v32  ;;  %v1935_v37 = vmul.f32 0.35355338, %v1778_v33 }
 0x1c8   : > { %v3310_v35 = vpop.f32.mrf.mxu0  ;;  %v3315_v36 = vpop.f32.mrf.mxu1 }
 0x1c9   : > { %v1938_v38 = vsel %vm1629_vm2, %v1934_v34, -inf  ;;  %v1941_v39 = vsel %vm1629_vm2, %v1935_v37, -inf }
 0x1ca   : > { %1939 = vmax.xlane.f32.xlu0 %v1938_v38 }
 0x1ce   : > { %1942 = vmax.xlane.f32.xlu0 %v1941_v39 }
 0x1d0   : > { %v1930_v40 = vpop.f32.mrf.mxu1  ;;  %v1854_v41 = vpop.f32.mrf.mxu0 }
 0x1d1   : > { %v1936_v42 = vmul.f32 0.35355338, %v1854_v41  ;;  %v1937_v45 = vmul.f32 0.35355338, %v1930_v40 }
 0x1d2   : > { %v3320_v43 = vpop.f32.mrf.mxu0  ;;  %v3325_v44 = vpop.f32.mrf.mxu1 }
 0x1d3   : > { %v1944_v46 = vsel %vm1629_vm2, %v1936_v42, -inf  ;;  %v1947_v47 = vsel %vm1629_vm2, %v1937_v45, -inf }
 0x1d4   : > { %1945 = vmax.xlane.f32.xlu1 %v1944_v46 }
 0x1d8   : > { %1948 = vmax.xlane.f32.xlu1 %v1947_v47  ;;  %v3054_v47 = vld [vmem:[%s4264_s8] ss:$0 sm:$0xff]  ;;  %s2947_s8 = scalar_lea.hbm %s4223_s21, %s3068_s28 }
 0x253   : > { %v1940_v48 = vpop.xlane.xlu0 %1939 }
 0x254   : > { %v1950_v49 = vsub.f32 %v1934_v34, %v1940_v48 }
 0x256   : > { %v1954_v50 = vmul.f32 1.442695, %v1950_v49 }
 0x257   : > { %v1943_v51 = vpop.xlane.xlu0 %1942 }
 0x258   : > { %3448 = vpow2.f32 %v1954_v50  ;;  %v1951_v52 = vsub.f32 %v1935_v37, %v1943_v51 }
 0x25a   : > { %v1956_v53 = vmul.f32 1.442695, %v1951_v52 }
 0x25c   : > { %3450 = vpow2.f32 %v1956_v53 }
 0x25d   : > { %v1946_v54 = vpop.xlane.xlu1 %1945 }
 0x25e   : > { %v1952_v55 = vsub.f32 %v1936_v42, %v1946_v54 }
 0x260   : > { %v1958_v56 = vmul.f32 1.442695, %v1952_v55 }
 0x261   : > { %v1949_v57 = vpop.xlane.xlu1 %1948 }
 0x262   : > { %3452 = vpow2.f32 %v1958_v56  ;;  %v1953_v58 = vsub.f32 %v1937_v45, %v1949_v57 }
 0x264   : > { %v1960_v59 = vmul.f32 1.442695, %v1953_v58  ;;  %v2619_v58 = vld [vmem:[%s4265_s9 + $0x18] sm:$0xff] }
 0x265   : > { %v3449_v60 = vpop.eup %3448 }
 0x266   : > { %3454 = vpow2.f32 %v1960_v59  ;;  %v1962_v61 = vsel %vm1629_vm2, %v3449_v60, 0.0  ;;  %v2617_v59 = vld [vmem:[%s4265_s9 + $0x8] sm:$0xff] }
 0x267   : > { %1963 = vadd.xlane.f32.xlu0 %v1962_v61  ;;  %v2708_v61 = vld [vmem:[%s4213_s11 + $0x38] sm:$0xff] }
 0x269   : > { %v3451_v62 = vpop.eup %3450 }
 0x26a   : > { %v1965_v63 = vsel %vm1629_vm2, %v3451_v62, 0.0 }
 0x26b   : > { %1966 = vadd.xlane.f32.xlu1 %v1965_v63  ;;  %v2706_v63 = vld [vmem:[%s4213_s11 + $0x28] sm:$0xff] }
 0x26f   : > { %v3453_v0 = vpop.eup %3452 }
 0x270   : > { %v1968_v1 = vsel %vm1629_vm2, %v3453_v0, 0.0 }
 0x271   : > { %1969 = vadd.xlane.f32.xlu0 %v1968_v1  ;;  %v2704_v1 = vld [vmem:[%s4213_s11 + $0x18] sm:$0xff] }
 0x273   : > { %v3455_v3 = vpop.eup %3454 }
 0x274   : > { %v1971_v4 = vsel %vm1629_vm2, %v3455_v3, 0.0 }
 0x275   : > { %1972 = vadd.xlane.f32.xlu1 %v1971_v4 }
 0x2f0   : > { %v1964_v5 = vpop.xlane.xlu0 %1963 }
 0x2f1   : > { %3456 = vrcp.f32 %v1964_v5 }
 0x2f4   : > { %v1967_v6 = vpop.xlane.xlu1 %1966 }
 0x2f5   : > { %3458 = vrcp.f32 %v1967_v6 }
 0x2fa   : > { %v1970_v7 = vpop.xlane.xlu0 %1969 }
 0x2fb   : > { %3460 = vrcp.f32 %v1970_v7  ;;  %v3055_v7 = vld [vmem:[%s4217_s15] ss:$0 sm:$0xff] }
 0x2fe   : > { %v3457_v10 = vpop.eup %3456  ;;  %v1973_v11 = vpop.xlane.xlu1 %1972 }
 0x2ff   : > { %3462 = vrcp.f32 %v1973_v11  ;;  %v1978_v12 = vmul.f32 %v3457_v10, %v3449_v60  ;;  %v2616_v60 = vld [vmem:[%s4265_s9] sm:$0xff] }
 0x300   : > { %v3056_v10 = vld [vmem:[%s4218_s16] ss:$0 sm:$0xff] }
 0x301   : > { %3329 = vmatmul.mubr.msk.f32.vlgmr.msra.gmra.mxu0 %vm1629_vm2, %v1978_v12 }
 0x302   : > { %v3459_v15 = vpop.eup %3458  ;;  %3337 = vmatpush3.msra.mxu0 %v1556_v13  ;;  %3338 = vmatprep.mubr.msk.f32.mxu0 %vm3533_vm1, %v3532_v2  ;;  %v2703_v13 = vld [vmem:[%s4213_s11 + $0x10] sm:$0xff] }
 0x303   : > { %v1979_v16 = vmul.f32 %v3459_v15, %v3451_v62  ;;  %3346 = vmatprep.subr.mxu0 %v3532_v2  ;;  %v2707_v62 = vld [vmem:[%s4213_s11 + $0x30] sm:$0xff]  ;;  %v2701_v15 = vld [vmem:[%s4213_s11] sm:$0xff] }
 0x305   : > { %3334 = vmatmul.mubr.msk.f32.vlgmr.msra.gmra.mxu1 %vm1629_vm2, %v1979_v16  ;;  %v3057_v16 = vld [vmem:[%s4212_s10] ss:$0 sm:$0xff] }
 0x306   : > { %3342 = vmatpush3.msra.mxu1 %v1626_v17  ;;  %3343 = vmatprep.mubr.msk.f32.mxu1 %vm3533_vm1, %v3532_v2 }
 0x307   : > { %3351 = vmatprep.subr.mxu1 %v3532_v2 }
 0x308   : > { %v3461_v18 = vpop.eup %3460 }
 0x309   : > { %v1980_v19 = vmul.f32 %v3461_v18, %v3453_v0  ;;  %v2705_v0 = vld [vmem:[%s4213_s11 + $0x20] sm:$0xff] }
 0x30b   : > { %3339 = vmatmul.mubr.msk.f32.vlgmr.msra.gmra.mxu0 %vm1629_vm2, %v1980_v19 }
 0x30c   : > { %v3463_v20 = vpop.eup %3462  ;;  %3348 = vmatprep.mubr.msk.f32.mxu0 %vm3533_vm1, %v3532_v2  ;;  %3347 = vmatpush3.msra.mxu0 %v2274_v22 }
 0x30d   : > { %v1981_v21 = vmul.f32 %v3463_v20, %v3455_v3  ;;  %3356 = vmatprep.subr.mxu0 %v3532_v2 }
 0x30f   : > { %3344 = vmatmul.mubr.msk.f32.vlgmr.msra.gmra.mxu1 %vm1629_vm2, %v1981_v21  ;;  %v3059_v21 = vld [vmem:[%s4214_s12] ss:$0 sm:$0xff] }
 0x310   : > { %3353 = vmatprep.mubr.msk.f32.mxu1 %vm3533_vm1, %v3532_v2  ;;  %3352 = vmatpush3.msra.mxu1 %v2275_v23 }
 0x311   : > { %3361 = vmatprep.subr.mxu1 %v3532_v2 }
 0x3c1   : > { %v2051_v25 = vpop.f32.mrf.mxu0 }
 0x3c2   : > { %3349 = vmatmul.mubr.msk.f32.vlgmr.msra.gmra.mxu0 %vm1629_vm2, %v2051_v25 }
 0x3c3   : > { %v3330_v26 = vpop.f32.mrf.mxu0  ;;  %3357 = vmatpush3.msra.mxu0 %v2276_v24  ;;  %3358 = vmatprep.mubr.msk.f32.mxu0 %vm3533_vm1, %v3532_v2 }
 0x3c4   : > { %3366 = vmatprep.subr.mxu0 %v3532_v2 }
 0x3c5   : > { %v2124_v28 = vpop.f32.mrf.mxu1 }
 0x3c6   : > { %3354 = vmatmul.mubr.msk.f32.vlgmr.msra.gmra.mxu1 %vm1629_vm2, %v2124_v28 }
 0x3c7   : > { %v3335_v29 = vpop.f32.mrf.mxu1  ;;  %3362 = vmatpush3.msra.mxu1 %v2277_v27  ;;  %3363 = vmatprep.mubr.msk.f32.mxu1 %vm3533_vm1, %v3532_v2 }
 0x3c8   : > { %3377 = vmatprep.subr.mxu1 %v3532_v2 }
 0x3cb   : > { %v2197_v30 = vpop.f32.mrf.mxu0 }
 0x3cc   : > { %3359 = vmatmul.mubr.msk.f32.vlgmr.msra.gmra.mxu0 %vm1629_vm2, %v2197_v30 }
 0x3cd   : > { %v3340_v31 = vpop.f32.mrf.mxu0  ;;  %3374 = vmatprep.mubr.msk.f32.mxu0 %vm3533_vm1, %v3532_v2  ;;  %3367 = vmatpush3.msra.mxu0 %v2619_v58 }
 0x3ce   : > { %3368 = vmatprep.subr.mxu0 %v3532_v2 }
 0x3cf   : > { %v2270_v32 = vpop.f32.mrf.mxu1 }
 0x3d0   : > { %3364 = vmatmul.mubr.msk.f32.vlgmr.msra.gmra.mxu1 %vm1629_vm2, %v2270_v32  ;;  %v2823_v32 = vld [vmem:[%s4215_s13 + $0x18] sm:$0xff] }
 0x3d1   : > { %v3345_v33 = vpop.f32.mrf.mxu1  ;;  %3393 = vmatprep.mubr.msk.f32.mxu1 %vm3533_vm1, %v3532_v2  ;;  %3378 = vmatpush3.msra.mxu1 %v2708_v61 }
 0x3d2   : > { %3379 = vmatprep.subr.mxu1 %v3532_v2  ;;  %v2822_v33 = vld [vmem:[%s4215_s13 + $0x10] sm:$0xff] }
 0x3d3   : > { %3380 = vmatpush3.msra.mxu1 %v2707_v62 }
 0x3d4   : > { %3381 = vmatprep.subr.mxu1 %v3532_v2 }
 0x3d5   : > { %3382 = vmatpush3.msra.mxu1 %v2706_v63 }
 0x3d6   : > { %3383 = vmatprep.subr.mxu1 %v3532_v2 }
 0x3d7   : > { %3384 = vmatpush3.msra.mxu1 %v2705_v0 }
 0x3d8   : > { %3385 = vmatprep.subr.mxu1 %v3532_v2 }
 0x3d9   : > { %3386 = vmatpush3.msra.mxu1 %v2704_v1 }
 0x3da   : > { %3387 = vmatprep.subr.mxu1 %v3532_v2 }
 0x3db   : > { %3388 = vmatpush3.msra.mxu1 %v2703_v13 }
 0x3dc   : > { %3389 = vmatprep.subr.mxu1 %v3532_v2 }
 0x3dd   : > { %3390 = vmatpush3.msra.mxu1 %v2702_v14 }
 0x3de   : > { %3391 = vmatprep.subr.mxu1 %v3532_v2 }
 0x3df   : > { %3392 = vmatpush3.msra.mxu1 %v2701_v15 }
 0x482   : > { %v2347_v34 = vpop.f32.mrf.mxu0 }
 0x483   : > { %v2570_v40 = vsel %vm697_vm0, %v2347_v34, 0.0  ;;  %v2821_v34 = vld [vmem:[%s4215_s13 + $0x8] sm:$0xff] }
 0x484   : > { %v3350_v35 = vpop.f32.mrf.mxu0 }
 0x485   : > { %v2820_v35 = vld [vmem:[%s4215_s13] sm:$0xff] }
 0x486   : > { %v2420_v36 = vpop.f32.mrf.mxu1 }
 0x487   : > { %v2571_v38 = vsel %vm697_vm0, %v2420_v36, 0.0 }
 0x488   : > { %v3355_v37 = vpop.f32.mrf.mxu1  ;;  %v2572_v42 = vadd.f32 %v2571_v38, %v2570_v40  ;;  %v3061_v40 = vld [vmem:[%s4219_s17] ss:$0 sm:$0xff] }
 0x48c   : > { %v2493_v39 = vpop.f32.mrf.mxu0 }
 0x48d   : > { %v2573_v41 = vsel %vm697_vm0, %v2493_v39, 0.0 }
 0x48e   : > { %v3360_v43 = vpop.f32.mrf.mxu0  ;;  %v2574_v44 = vadd.f32 %v2573_v41, %v2572_v42  ;;  %v3062_v42 = vld [vmem:[%s4220_s18] ss:$0 sm:$0xff] }
 0x490   : > { %v2566_v45 = vpop.f32.mrf.mxu1 }
 0x491   : > { %v2575_v46 = vsel %vm697_vm0, %v2566_v45, 0.0 }
 0x492   : > { %v2576_v48 = vadd.f32 %v2575_v46, %v2574_v44  ;;  %v3365_v49 = vpop.f32.mrf.mxu1 }
 0x494   : > { %v2584_v50 = vadd.f32 %v3054_v47, %v2576_v48 }
 0x496   : > { %v2585_v51 = vadd.f32 %v2584_v50, %v3728_v9  ;;  %v2618_v9 = vld [vmem:[%s4265_s9 + $0x10] sm:$0xff]  ;;  %s2936_s9 = scalar_lea.sflag [#allocation3], %s645_s4 }
 0x497   : > { %3369 = vmatpush3.msra.mxu0 %v2618_v9  ;;  %v3065_v9 = vld [vmem:[%s4221_s19] ss:$0 sm:$0xff] }
 0x498   : > { %v2588_v52 = vsel %vm697_vm0, %v2585_v51, 0.0  ;;  %3370 = vmatprep.subr.mxu0 %v3532_v2 }
 0x499   : > { %2589 = vadd.xlane.f32.xlu0 %v2588_v52  ;;  %3371 = vmatpush3.msra.mxu0 %v2617_v59 }
 0x49a   : > { %3372 = vmatprep.subr.mxu0 %v3532_v2 }
 0x49b   : > { %3373 = vmatpush3.msra.mxu0 %v2616_v60  ;;  %v3066_v60 = vld [vmem:[%s4222_s20] ss:$0 sm:$0xff] }
 0x49c   : > { %3396 = vmatprep.subr.mxu0 %v3532_v2 }
 0x522   : > { %v2590_v53 = vpop.xlane.xlu0 %2589 }
 0x523   : > { %v2592_v54 = vmul.f32 0.03125, %v2590_v53 }
 0x525   : > { %v2593_v55 = vsub.f32 %v2585_v51, %v2592_v54 }
 0x527   : > { %v2594_v56 = vmul.f32 %v2593_v55, %v2593_v55 }
 0x529   : > { %v2595_v57 = vsel %vm697_vm0, %v2594_v56, 0.0 }
 0x52a   : > { %2596 = vadd.xlane.f32.xlu1 %v2595_v57 }
 0x5b3   : > { %v2597_v3 = vpop.xlane.xlu1 %2596 }
 0x5b4   : > { %v2598_v4 = vmul.f32 0.03125, %v2597_v3 }
 0x5b6   : > { %v2599_v5 = vadd.f32 1e-05, %v2598_v4 }
 0x5b8   : > { %3464 = vrsqrt.f32 %v2599_v5 }
 0x5c5   : > { %v3465_v6 = vpop.eup %3464 }
 0x5c6   : > { %v2601_v8 = vmul.f32 %v3465_v6, %v2593_v55 }
 0x5c8   : > { %v2608_v11 = vmul.f32 %v3055_v7, %v2601_v8 }
 0x5ca   : > { %v2615_v12 = vadd.f32 %v3056_v10, %v2608_v11 }
 0x5cc   : > { %3375 = vmatmul.mubr.msk.f32.vlgmr.msra.gmra.mxu0 %vm697_vm0, %v2615_v12 }
 0x5cd   : > { %3404 = vmatprep.mubr.msk.f32.mxu0 %vm3533_vm1, %v3532_v2  ;;  %3397 = vmatpush3.msra.mxu0 %v2823_v32 }
 0x5ce   : > { %3398 = vmatprep.subr.mxu0 %v3532_v2 }
 0x5cf   : > { %3399 = vmatpush3.msra.mxu0 %v2822_v33 }
 0x5d0   : > { %3400 = vmatprep.subr.mxu0 %v3532_v2 }
 0x5d1   : > { %3401 = vmatpush3.msra.mxu0 %v2821_v34 }
 0x5d2   : > { %3402 = vmatprep.subr.mxu0 %v3532_v2  ;;  %v3063_v2 = vld [vmem:[%s4216_s14] ss:$0 sm:$0xff] }
 0x5d3   : > { %3403 = vmatpush3.msra.mxu0 %v2820_v35 }
 0x68c   : > { %v2696_v17 = vpop.f32.mrf.mxu0 }
 0x68d   : > { %v2697_v18 = vadd.f32 %v3057_v16, %v2696_v17 }
 0x68e   : > { %v3376_v19 = vpop.f32.mrf.mxu0 }
 0x68f   : > { %v2700_v20 = vmax.f32 %v2697_v18, 0.0 }
 0x691   : > { %3394 = vmatmul.mubr.msk.f32.vlgmr.msra.gmra.mxu1 %vm2716_vm3, %v2700_v20 }
 0x751   : > { %v2786_v22 = vpop.f32.mrf.mxu1 }
 0x752   : > { %v2787_v23 = vadd.f32 %v3059_v21, %v2786_v22 }
 0x753   : > { %v3395_v24 = vpop.f32.mrf.mxu1 }
 0x754   : > { %v2790_v25 = vadd.f32 %v2787_v23, %v2615_v12 }
 0x756   : > { %v2793_v26 = vsel %vm697_vm0, %v2790_v25, 0.0 }
 0x757   : > { %2794 = vadd.xlane.f32.xlu0 %v2793_v26 }
 0x7e0   : > { %v2795_v27 = vpop.xlane.xlu0 %2794 }
 0x7e1   : > { %v2796_v28 = vmul.f32 0.03125, %v2795_v27 }
 0x7e3   : > { %v2797_v29 = vsub.f32 %v2790_v25, %v2796_v28 }
 0x7e5   : > { %v2798_v30 = vmul.f32 %v2797_v29, %v2797_v29 }
 0x7e7   : > { %v2799_v31 = vsel %vm697_vm0, %v2798_v30, 0.0 }
 0x7e8   : > { %2800 = vadd.xlane.f32.xlu1 %v2799_v31 }
 0x871   : > { %v2801_v36 = vpop.xlane.xlu1 %2800 }
 0x872   : > { %v2802_v37 = vmul.f32 0.03125, %v2801_v36 }
 0x874   : > { %v2803_v38 = vadd.f32 1e-05, %v2802_v37 }
 0x876   : > { %3466 = vrsqrt.f32 %v2803_v38 }
 0x883   : > { %v3467_v39 = vpop.eup %3466 }
 0x884   : > { %v2805_v41 = vmul.f32 %v3467_v39, %v2797_v29 }
 0x886   : > { %v2812_v43 = vmul.f32 %v3061_v40, %v2805_v41 }
 0x888   : > { %v2819_v44 = vadd.f32 %v3062_v42, %v2812_v43 }
 0x88a   : > { %3405 = vmatmul.mubr.msk.f32.vlgmr.msra.gmra.mxu0 %vm697_vm0, %v2819_v44 }
 0x94a   : > { %v2900_v45 = vpop.f32.mrf.mxu0 }
 0x94b   : > { %v2901_v46 = vadd.f32 %v3063_v2, %v2900_v45 }
 0x94c   : > { %v3406_v47 = vpop.f32.mrf.mxu0 }
 0x94d   : > { %v2904_v48 = vadd.f32 %v2901_v46, %v2819_v44 }
 0x94f   : > { %v2907_v49 = vsel %vm697_vm0, %v2904_v48, 0.0 }
 0x950   : > { %2908 = vadd.xlane.f32.xlu0 %v2907_v49 }
 0x9d9   : > { %v2909_v50 = vpop.xlane.xlu0 %2908 }
 0x9da   : > { %v2910_v51 = vmul.f32 0.03125, %v2909_v50 }
 0x9dc   : > { %v2911_v52 = vsub.f32 %v2904_v48, %v2910_v51 }
 0x9de   : > { %v2912_v53 = vmul.f32 %v2911_v52, %v2911_v52 }
 0x9e0   : > { %v2913_v54 = vsel %vm697_vm0, %v2912_v53, 0.0 }
 0x9e1   : > { %2914 = vadd.xlane.f32.xlu1 %v2913_v54 }
 0xa6a   : > { %v2915_v55 = vpop.xlane.xlu1 %2914 }
 0xa6b   : > { %v2916_v56 = vmul.f32 0.03125, %v2915_v55 }
 0xa6d   : > { %v2917_v57 = vadd.f32 1e-05, %v2916_v56 }
 0xa6f   : > { %3468 = vrsqrt.f32 %v2917_v57 }
 0xa7c   : > { %v3469_v58 = vpop.eup %3468 }
 0xa7d   : > { %v2919_v59 = vmul.f32 %v3469_v58, %v2911_v52 }
 0xa7f   : > { %v2926_v61 = vmul.f32 %v3065_v9, %v2919_v59 }
 0xa81   : > { %v2933_v62 = vadd.f32 %v3066_v60, %v2926_v61 }
 0xa83   : > { %2934 = vst.msk [vmem:[%s647_s2] sm:$0xff] %vm697_vm0, %v2933_v62 }
 0xa84   : > { %3483 = shalt.err (!%p3480_p3)
}
 0xa85   : > { %s3484_s6 = scalar_lea.hbm %s2947_s8, 128  ;;  %s3488_s22 = scalar_lea.hbm %s4223_s21, 256 }
 0xa86   : > { %p3485_p4 = scmp.ne.s32.totalorder %s2947_s8, %s3484_s6  ;;  %p3489_p9 = scmp.lt.s32.totalorder %s2947_s8, %s4223_s21 }
 0xa87   : > { %p3490_p10 = scmp.lt.s32.totalorder %s3488_s22, %s3484_s6 }
 0xa88   : > { %p3486_p7 = pnand %p3485_p4, %p3683_p5 }
 0xa89   : > { %p3491_p11 = por %p3490_p10, %p3489_p9 }
 0xa8a   : > { %p3487_p8 = pneg %p3486_p7 }
 0xa8c   : > { %p3492_p12 = pnand %p3491_p11, %p3487_p8 }
 0xa8e   : > { %3495 = shalt.err (!%p3492_p12)
}
 0xa8f   : > { %3407 = dma.vmem_to_hbm [thread:$0]  (%p3683_p5), %s2950_s27, 128, %s2947_s8, %s2936_s9  }
 0xa90 PF: > { %s4266_s2 = sld [smem:[#allocation7_spill]] }
 0xa91   : > { %s4267_s0 = sld [smem:[#allocation5_spill]] }
 0xa96   : > { %p3413_p13 = scmp.ge.s32.totalorder %s4266_s2, 2 }
 0xa97   : > { %s2961_s26 = sand.u32 1, %s4267_s0  }
 0xa98   : > { %p3410_p0 = pnand %p3413_p13, %p3687_p6  ;;  %s2962_s3 = scalar_lea.sflag [#allocation3], %s2961_s26 }
 0xa9a   : > { %p3411_p1 = pneg %p3410_p0 }
 0xa9c   : > { %3513 = dma.done.wait (%p3411_p1), %s2962_s3, 128  }
 0xa9d   : > { %3515 = vsyncadd (%p3411_p1), %s2962_s3, 4294967168  ;;  %s4269_s27 = sld [smem:[#allocation8_spill]]  ;;  %s4272_s2 = smov %s3522_s25 }
 0xa9e   : > { %s4270_s6 = sld [smem:[#allocation6_spill]] }
 0xa9f   : > { %s4271_s26 = sld [smem:[#allocation9_spill]] }
 0xaa3   : > { %p31_p2 = scmp.ge.s32.totalorder %s4269_s27, 4  }
 0xaa4   : > { %s4273_s25 = smov %s4270_s6 }
 0xaa5   :  { %33 = sbr.rel (!%p31_p2) target bundleno = 14 (0xe), region = 139 }
 0xaaa   :  { %2967 = vsyncpa [#allocation3], 1 }
 0xaab   :  { %2969 = vsyncpa [#allocation3 + $0x1], 1 }

</bundles_post_ra>
